<compile_context>
chip_gen: v7x
topology: tpu7x:2x2x1
jax: 0.10.0
libtpu: 0.0.40
codegen_flags: <defaults>
</compile_context>

<pallas_src>
import functools

import jax
import jax.numpy as jnp
from jax import lax
from jax.experimental import pallas as pl
from jax.experimental.pallas import tpu as pltpu

EPS = 1e-5
PRELU_ALPHA = 0.25      # PyTorch nn.PReLU default init (final PReLU is fresh)
_ROW_PAD = 8            # aligned row offset of c1 inside its padded scratch


# ----------------------------- fused Pallas kernel --------------------------

def _fused_kernel(x_ref, t1_ref, t2_ref, s_ref, p_ref, f_ref, ft_ref,
                  o_ref, xp_s, c1p_s, *, n, h, w, cin, cout, is_last):
    oh, ow = 2 * h, 2 * w
    m1 = n * h                      # rows of the conv1/skip matmul
    m2 = n * oh                     # rows of the full-resolution activations
    lanes = ow * cout               # lane-dense width (= 128 in the test)
    count = jnp.float32(n * oh * ow)
    dn = (((1,), (0,)), ((), ()))   # plain (M,K)x(K,N) contraction

    fold = f_ref[...]               # (lanes, cout)  0/1 lane -> channel fold
    spread = ft_ref[...]            # (cout, lanes)  its transpose
    prm = p_ref[...]                # (11, lanes) per-channel params, lane-tiled
    b1_t, bu_t, b2_t = prm[0:1], prm[1:2], prm[2:3]
    g1_t, be1_t = prm[3:4], prm[4:5]
    g2_t, be2_t = prm[5:6], prm[6:7]
    gu_t, beu_t = prm[7:8], prm[8:9]
    a1_t, a2_t = prm[9:10], prm[10:11]

    def bn_scale_bias(v, gamma_t, beta_t):
        # training-mode BatchNorm statistics over all (N, OH, OW) positions
        s_ch = jnp.sum(lax.dot_general(v, fold, dn,
                                       preferred_element_type=jnp.float32),
                       axis=0, keepdims=True)                       # (1, cout)
        q_ch = jnp.sum(lax.dot_general(v * v, fold, dn,
                                       preferred_element_type=jnp.float32),
                       axis=0, keepdims=True)                       # (1, cout)
        mean_t = lax.dot_general(s_ch, spread, dn,
                                 preferred_element_type=jnp.float32) / count
        msq_t = lax.dot_general(q_ch, spread, dn,
                                preferred_element_type=jnp.float32) / count
        var_t = msq_t - mean_t * mean_t
        scale_t = gamma_t * lax.rsqrt(var_t + EPS)
        return scale_t, beta_t - mean_t * scale_t

    def prelu(v, a):
        return jnp.where(v >= 0, v, a * v)

    # ---- conv1 (ConvT k3 s2 p1 op1) + skip (ConvT k1 s2 op1), phase-decomposed
    xp_s[...] = jnp.zeros_like(xp_s)
    xp_s[:, 0:h, :] = x_ref[...]
    big = lax.dot_general(xp_s[:, 0:h, :].reshape(m1, w * cin), t1_ref[0], dn,
                          preferred_element_type=jnp.float32)
    big = big + lax.dot_general(xp_s[:, 1:h + 1, :].reshape(m1, w * cin),
                                t1_ref[1], dn,
                                preferred_element_type=jnp.float32)

    se = s_ref[0]                   # (m2, m1): picks even output rows
    so = s_ref[1]                   # (m2, m1): picks odd output rows
    c1_raw = (lax.dot_general(se, big[:, 0:lanes], dn,
                              preferred_element_type=jnp.float32)
              + lax.dot_general(so, big[:, lanes:2 * lanes], dn,
                                preferred_element_type=jnp.float32)
              + b1_t)
    skip_raw = lax.dot_general(se, big[:, 2 * lanes:3 * lanes], dn,
                               preferred_element_type=jnp.float32) + bu_t

    s1, o1 = bn_scale_bias(c1_raw, g1_t, be1_t)
    c1 = prelu(c1_raw * s1 + o1, a1_t)
    su, ou = bn_scale_bias(skip_raw, gu_t, beu_t)
    skip = skip_raw * su + ou

    # ---- conv2 (ConvT k3 s1 p1 == 3x3 SAME conv): 3 Toeplitz matmuls over
    # row-shifted views of zero-padded c1.
    c1p_s[...] = jnp.zeros_like(c1p_s)
    c1p_s[:, _ROW_PAD:_ROW_PAD + oh, :] = c1.reshape(n, oh, lanes)
    c2_raw = b2_t
    for dh in range(3):
        r0 = _ROW_PAD - 1 + dh
        c2_raw = c2_raw + lax.dot_general(
            c1p_s[:, r0:r0 + oh, :].reshape(m2, lanes), t2_ref[dh], dn,
            preferred_element_type=jnp.float32)

    s2, o2 = bn_scale_bias(c2_raw, g2_t, be2_t)
    c2 = prelu(c2_raw * s2 + o2, a2_t)

    z = c2 + skip
    if is_last:
        o_ref[...] = jax.nn.sigmoid(z)
    else:
        o_ref[...] = jnp.where(z >= 0, z, PRELU_ALPHA * z)


# ----------------------------- weight preprocessing -------------------------

def _build_t1(w1_pt, wu_pt, W):
    """Block-Toeplitz weight for the phase-decomposed stride-2 deconvs.

    Returns (2, W*Cin, 3*2W*Cout): row block di multiplies input row m+di;
    output columns = [row-phase 0 | row-phase 1 | skip even rows], each
    lane-dense as (out_col, cout).
    """
    cin, cout = w1_pt.shape[0], w1_pt.shape[1]
    kmap = [[1, None], [2, 0]]          # kmap[out_phase][delta] -> kernel idx
    zero = jnp.zeros((cin, cout), w1_pt.dtype)
    blocks = []
    for ph in range(2):
        for pw in range(2):
            for di in range(2):
                for dj in range(2):
                    kh, kw = kmap[ph][di], kmap[pw][dj]
                    blocks.append(zero if kh is None or kw is None
                                  else w1_pt[:, :, kh, kw])
    w1p = jnp.stack(blocks).reshape(2, 2, 2, 2, cin, cout)  # [ph,pw,di,dj,ci,co]

    wi = jnp.arange(W)[:, None, None]
    dj = jnp.arange(2)[None, :, None]
    wo = jnp.arange(W)[None, None, :]
    sel = (wi == wo + dj).astype(w1p.dtype)                 # (W, 2, W)
    t1c = jnp.einsum("xjw,pqdjio->dxipwqo", sel, w1p,
                     precision=lax.Precision.HIGHEST)
    t1c = t1c.reshape(2, W * cin, 2 * (2 * W) * cout)

    wu = wu_pt[:, :, 0, 0]                                  # (Cin, Cout)
    selu = (jnp.arange(2 * W)[None, :]
            == 2 * jnp.arange(W)[:, None]).astype(wu.dtype)  # (W, 2W)
    t1s = jnp.einsum("xw,io->xiwo", selu, wu,
                     precision=lax.Precision.HIGHEST).reshape(W * cin,
                                                              2 * W * cout)
    t1s = jnp.stack([t1s, jnp.zeros_like(t1s)])             # (2, W*Cin, 2W*Cout)
    return jnp.concatenate([t1c, t1s], axis=2)


def _build_t2(w2_pt, W2):
    """Toeplitz weights for the 3x3 stride-1 deconv: (3, W2*C, W2*C)."""
    c = w2_pt.shape[0]
    wf2 = jnp.transpose(w2_pt[:, :, ::-1, ::-1], (2, 3, 0, 1))  # [dh,dw,ci,co]
    wi = jnp.arange(W2)[:, None, None]
    dw = jnp.arange(3)[None, :, None]
    wo = jnp.arange(W2)[None, None, :]
    sel = (wi == wo - 1 + dw).astype(wf2.dtype)                 # (W2, 3, W2)
    t2 = jnp.einsum("xdw,hdio->hxiwo", sel, wf2,
                    precision=lax.Precision.HIGHEST)
    return t2.reshape(3, W2 * c, W2 * c)


# ----------------------------- wrapper ---------------------------------------

def deconv_res_block(x_nhwc, params, is_last=False):
    """Fused DeconvResBlock forward. x_nhwc: (N, H, W, Cin) float32."""
    N, H, W, Cin = x_nhwc.shape
    Cout = params["b1"].shape[0]
    OH, OW = 2 * H, 2 * W
    lanes = OW * Cout

    t1 = _build_t1(params["w1_pt"], params["wu_pt"], W)      # (2, W*Cin, 3*lanes)
    t2 = _build_t2(params["w2_pt"], OW)                      # (3, lanes, lanes)

    # row-interleave selectors: output row n*OH + 2m + ph <- matmul row n*H + m
    r = jnp.arange(N * OH, dtype=jnp.int32)[:, None]
    s = jnp.arange(N * H, dtype=jnp.int32)[None, :]
    sel = jnp.stack([(r == 2 * s).astype(jnp.float32),
                     (r == 2 * s + 1).astype(jnp.float32)])  # (2, N*OH, N*H)

    # lane <-> channel fold matrices (lane l holds channel l % Cout)
    fold = jnp.tile(jnp.eye(Cout, dtype=jnp.float32), (OW, 1))   # (lanes, Cout)
    spread = fold.T                                              # (Cout, lanes)

    def lane_tile(v):
        return jnp.tile(v.reshape(1, Cout).astype(jnp.float32), (1, OW))

    prm = jnp.concatenate(
        [lane_tile(params[k]) for k in
         ("b1", "bu", "b2", "g1", "be1", "g2", "be2", "gu", "beu", "a1", "a2")],
        axis=0)                                                  # (11, lanes)

    x2 = x_nhwc.reshape(N, H, W * Cin)

    kern = functools.partial(_fused_kernel, n=N, h=H, w=W, cin=Cin, cout=Cout,
                             is_last=is_last)
    out2d = pl.pallas_call(
        kern,
        out_shape=jax.ShapeDtypeStruct((N * OH, lanes), jnp.float32),
        grid=(1,),
        in_specs=[
            pl.BlockSpec((N, H, W * Cin), lambda i: (0, 0, 0)),
            pl.BlockSpec(t1.shape, lambda i: (0, 0, 0)),
            pl.BlockSpec(t2.shape, lambda i: (0, 0, 0)),
            pl.BlockSpec(sel.shape, lambda i: (0, 0, 0)),
            pl.BlockSpec(prm.shape, lambda i: (0, 0)),
            pl.BlockSpec(fold.shape, lambda i: (0, 0)),
            pl.BlockSpec(spread.shape, lambda i: (0, 0)),
        ],
        out_specs=pl.BlockSpec((N * OH, lanes), lambda i: (0, 0)),
        scratch_shapes=[
            pltpu.VMEM((N, H + 8, W * Cin), jnp.float32),
            pltpu.VMEM((N, OH + _ROW_PAD + 2, lanes), jnp.float32),
        ],
        compiler_params=pltpu.CompilerParams(
            dimension_semantics=("arbitrary",)),
    )(x2, t1, t2, sel, prm, fold, spread)
    return out2d.reshape(N, OH, OW, Cout)


# ----------------------------- reference (pure JAX) --------------------------

def _flip_to_hwio(w_pt):
    return jnp.transpose(w_pt[:, :, ::-1, ::-1], (2, 3, 0, 1))


def _dilate_pad(x, stride, pad, out_pad, K):
    lo = K - 1 - pad
    hi = K - 1 - pad + out_pad
    cfg = [(0, 0, 0), (lo, hi, stride - 1), (lo, hi, stride - 1), (0, 0, 0)]
    return lax.pad(x, jnp.float32(0.0), cfg)


def _ref_conv(x_pad, w_hwio, b):
    y = lax.conv_general_dilated(x_pad, w_hwio, (1, 1), "VALID",
                                 dimension_numbers=("NHWC", "HWIO", "NHWC"))
    return y + b.reshape(1, 1, 1, -1)


def _ref_bn(x, gamma, beta):
    mean = jnp.mean(x, axis=(0, 1, 2))
    var = jnp.var(x, axis=(0, 1, 2))
    scale = gamma * lax.rsqrt(var + EPS)
    return x * scale + (beta - mean * scale)


def _ref_prelu(x, a):
    return jnp.where(x >= 0, x, a * x)


def ref_forward(x_nhwc, p, is_last=False):
    c1_raw = _ref_conv(_dilate_pad(x_nhwc, 2, 1, 1, 3),
                       _flip_to_hwio(p["w1_pt"]), p["b1"])
    c1 = _ref_prelu(_ref_bn(c1_raw, p["g1"], p["be1"]), p["a1"])
    c2_raw = _ref_conv(_dilate_pad(c1, 1, 1, 0, 3),
                       _flip_to_hwio(p["w2_pt"]), p["b2"])
    c2 = _ref_prelu(_ref_bn(c2_raw, p["g2"], p["be2"]), p["a2"])
    us_raw = _ref_conv(_dilate_pad(x_nhwc, 2, 0, 1, 1),
                       _flip_to_hwio(p["wu_pt"]), p["bu"])
    skip = _ref_bn(us_raw, p["gu"], p["beu"])
    z = c2 + skip
    return jax.nn.sigmoid(z) if is_last else _ref_prelu(z, PRELU_ALPHA)


# ----------------------------- main -------------------------------------------

if __name__ == "__main__":
    key = jax.random.PRNGKey(0)
    N, Cin, H, W = 2, 4, 8, 8
    Cout = 8
    is_last = False

    k = jax.random.split(key, 14)
    params = {
        "w1_pt": jax.random.normal(k[0], (Cin, Cout, 3, 3), jnp.float32) * 0.1,
        "w2_pt": jax.random.normal(k[1], (Cout, Cout, 3, 3), jnp.float32) * 0.1,
        "wu_pt": jax.random.normal(k[2], (Cin, Cout, 1, 1), jnp.float32) * 0.1,
        "b1": jax.random.normal(k[3], (Cout,), jnp.float32) * 0.1,
        "b2": jax.random.normal(k[4], (Cout,), jnp.float32) * 0.1,
        "bu": jax.random.normal(k[5], (Cout,), jnp.float32) * 0.1,
        "g1": 1.0 + 0.1 * jax.random.normal(k[7], (Cout,), jnp.float32),
        "be1": 0.1 * jax.random.normal(k[8], (Cout,), jnp.float32),
        "g2": 1.0 + 0.1 * jax.random.normal(k[9], (Cout,), jnp.float32),
        "be2": 0.1 * jax.random.normal(k[10], (Cout,), jnp.float32),
        "gu": 1.0 + 0.1 * jax.random.normal(k[11], (Cout,), jnp.float32),
        "beu": 0.1 * jax.random.normal(k[12], (Cout,), jnp.float32),
        "a1": jnp.full((Cout,), PRELU_ALPHA, jnp.float32),
        "a2": jnp.full((Cout,), PRELU_ALPHA, jnp.float32),
    }

    x_nchw = jax.random.normal(k[6], (N, Cin, H, W), jnp.float32)  # PyTorch layout
    x_nhwc = jnp.transpose(x_nchw, (0, 2, 3, 1))                   # kernel layout

    out = jax.block_until_ready(deconv_res_block(x_nhwc, params, is_last=is_last))
    ref = jax.block_until_ready(ref_forward(x_nhwc, params, is_last=is_last))

    assert out.shape == (N, 2 * H, 2 * W, Cout), out.shape
    max_err = float(jnp.max(jnp.abs(out - ref)))
    assert jnp.allclose(out, ref, rtol=5e-4, atol=5e-4), max_err

    print("KERNEL_OK")
</pallas_src>

<mosaic_0001>
module attributes {stable_mosaic.version = 11 : i64} {
  func.func @_fused_kernel(%arg0: i32, %arg1: memref<2x8x32xf32, #tpu.memory_space<vmem>>, %arg2: memref<2x32x384xf32, #tpu.memory_space<vmem>>, %arg3: memref<3x128x128xf32, #tpu.memory_space<vmem>>, %arg4: memref<2x32x16xf32, #tpu.memory_space<vmem>>, %arg5: memref<11x128xf32, #tpu.memory_space<vmem>>, %arg6: memref<128x8xf32, #tpu.memory_space<vmem>>, %arg7: memref<8x128xf32, #tpu.memory_space<vmem>>, %arg8: memref<32x128xf32, #tpu.memory_space<vmem>>, %arg9: memref<2x16x32xf32, #tpu.memory_space<vmem>>, %arg10: memref<2x26x128xf32, #tpu.memory_space<vmem>>) attributes {dimension_semantics = [#tpu.dimension_semantics<arbitrary>], iteration_bounds = array<i64: 1>, scalar_prefetch = 0 : i64, scratch_operands = 2 : i64, tpu.core_type = #tpu.core_type<tc>, window_params = [{pipeline_mode = #tpu.pipeline_mode<synchronous>, transform_indices = @transform_0, window_bounds = array<i64: 2, 8, 32>}, {pipeline_mode = #tpu.pipeline_mode<synchronous>, transform_indices = @transform_1, window_bounds = array<i64: 2, 32, 384>}, {pipeline_mode = #tpu.pipeline_mode<synchronous>, transform_indices = @transform_2, window_bounds = array<i64: 3, 128, 128>}, {pipeline_mode = #tpu.pipeline_mode<synchronous>, transform_indices = @transform_3, window_bounds = array<i64: 2, 32, 16>}, {pipeline_mode = #tpu.pipeline_mode<synchronous>, transform_indices = @transform_4, window_bounds = array<i64: 11, 128>}, {pipeline_mode = #tpu.pipeline_mode<synchronous>, transform_indices = @transform_5, window_bounds = array<i64: 128, 8>}, {pipeline_mode = #tpu.pipeline_mode<synchronous>, transform_indices = @transform_6, window_bounds = array<i64: 8, 128>}, {pipeline_mode = #tpu.pipeline_mode<synchronous>, transform_indices = @transform_7, window_bounds = array<i64: 32, 128>}]} {
    %c0 = arith.constant 0 : index
    %c0_0 = arith.constant 0 : index
    %0 = vector.load %arg6[%c0, %c0_0] : memref<128x8xf32, #tpu.memory_space<vmem>>, vector<128x8xf32>
    %c0_1 = arith.constant 0 : index
    %c0_2 = arith.constant 0 : index
    %1 = vector.load %arg7[%c0_1, %c0_2] : memref<8x128xf32, #tpu.memory_space<vmem>>, vector<8x128xf32>
    %c0_3 = arith.constant 0 : index
    %c0_4 = arith.constant 0 : index
    %2 = vector.load %arg5[%c0_3, %c0_4] : memref<11x128xf32, #tpu.memory_space<vmem>>, vector<11x128xf32>
    %3 = vector.extract_strided_slice %2 {offsets = [0, 0], sizes = [1, 128], strides = [1, 1]} : vector<11x128xf32> to vector<1x128xf32>
    %4 = vector.extract_strided_slice %2 {offsets = [1, 0], sizes = [1, 128], strides = [1, 1]} : vector<11x128xf32> to vector<1x128xf32>
    %5 = vector.extract_strided_slice %2 {offsets = [2, 0], sizes = [1, 128], strides = [1, 1]} : vector<11x128xf32> to vector<1x128xf32>
    %6 = vector.extract_strided_slice %2 {offsets = [3, 0], sizes = [1, 128], strides = [1, 1]} : vector<11x128xf32> to vector<1x128xf32>
    %7 = vector.extract_strided_slice %2 {offsets = [4, 0], sizes = [1, 128], strides = [1, 1]} : vector<11x128xf32> to vector<1x128xf32>
    %8 = vector.extract_strided_slice %2 {offsets = [5, 0], sizes = [1, 128], strides = [1, 1]} : vector<11x128xf32> to vector<1x128xf32>
    %9 = vector.extract_strided_slice %2 {offsets = [6, 0], sizes = [1, 128], strides = [1, 1]} : vector<11x128xf32> to vector<1x128xf32>
    %10 = vector.extract_strided_slice %2 {offsets = [7, 0], sizes = [1, 128], strides = [1, 1]} : vector<11x128xf32> to vector<1x128xf32>
    %11 = vector.extract_strided_slice %2 {offsets = [8, 0], sizes = [1, 128], strides = [1, 1]} : vector<11x128xf32> to vector<1x128xf32>
    %12 = vector.extract_strided_slice %2 {offsets = [9, 0], sizes = [1, 128], strides = [1, 1]} : vector<11x128xf32> to vector<1x128xf32>
    %13 = vector.extract_strided_slice %2 {offsets = [10, 0], sizes = [1, 128], strides = [1, 1]} : vector<11x128xf32> to vector<1x128xf32>
    %cst = arith.constant 0.000000e+00 : f32
    %14 = vector.broadcast %cst : f32 to vector<2x16x32xf32>
    %c0_5 = arith.constant 0 : index
    %c0_6 = arith.constant 0 : index
    %c0_7 = arith.constant 0 : index
    %15 = vector.load %arg9[%c0_5, %c0_6, %c0_7] : memref<2x16x32xf32, #tpu.memory_space<vmem>>, vector<2x16x32xf32>
    tpu.vector_store %arg9[%c0_5, %c0_6, %c0_7], %14 {strides = array<i32>} : memref<2x16x32xf32, #tpu.memory_space<vmem>>, vector<2x16x32xf32>,
    %c0_8 = arith.constant 0 : index
    %c0_9 = arith.constant 0 : index
    %c0_10 = arith.constant 0 : index
    %16 = vector.load %arg1[%c0_8, %c0_9, %c0_10] : memref<2x8x32xf32, #tpu.memory_space<vmem>>, vector<2x8x32xf32>
    %c0_11 = arith.constant 0 : index
    %c0_12 = arith.constant 0 : index
    %c0_13 = arith.constant 0 : index
    %17 = vector.load %arg9[%c0_11, %c0_12, %c0_13] : memref<2x16x32xf32, #tpu.memory_space<vmem>>, vector<2x8x32xf32>
    tpu.vector_store %arg9[%c0_11, %c0_12, %c0_13], %16 {strides = array<i32>} : memref<2x16x32xf32, #tpu.memory_space<vmem>>, vector<2x8x32xf32>,
    %c0_14 = arith.constant 0 : index
    %c0_15 = arith.constant 0 : index
    %c0_16 = arith.constant 0 : index
    %18 = vector.load %arg9[%c0_14, %c0_15, %c0_16] : memref<2x16x32xf32, #tpu.memory_space<vmem>>, vector<2x8x32xf32>
    %19 = vector.shape_cast %18 : vector<2x8x32xf32> to vector<16x32xf32>
    %c0_17 = arith.constant 0 : index
    %c0_18 = arith.constant 0 : index
    %c0_19 = arith.constant 0 : index
    %20 = vector.load %arg2[%c0_17, %c0_18, %c0_19] : memref<2x32x384xf32, #tpu.memory_space<vmem>>, vector<1x32x384xf32>
    %21 = vector.shape_cast %20 : vector<1x32x384xf32> to vector<32x384xf32>
    %cst_20 = arith.constant dense<0.000000e+00> : vector<16x384xf32>
    %22 = tpu.matmul %19, %21, %cst_20 {dimension_numbers = #tpu.dot_dimension_numbers<[1], [0], [0], [1], [0, 0, 1, 1], [], []>} : vector<16x32xf32>, vector<32x384xf32>, vector<16x384xf32> -> vector<16x384xf32>
    %c0_21 = arith.constant 0 : index
    %c1 = arith.constant 1 : index
    %c0_22 = arith.constant 0 : index
    %23 = vector.load %arg9[%c0_21, %c1, %c0_22] : memref<2x16x32xf32, #tpu.memory_space<vmem>>, vector<2x8x32xf32>
    %24 = vector.shape_cast %23 : vector<2x8x32xf32> to vector<16x32xf32>
    %c1_23 = arith.constant 1 : index
    %c0_24 = arith.constant 0 : index
    %c0_25 = arith.constant 0 : index
    %25 = vector.load %arg2[%c1_23, %c0_24, %c0_25] : memref<2x32x384xf32, #tpu.memory_space<vmem>>, vector<1x32x384xf32>
    %26 = vector.shape_cast %25 : vector<1x32x384xf32> to vector<32x384xf32>
    %cst_26 = arith.constant dense<0.000000e+00> : vector<16x384xf32>
    %27 = tpu.matmul %24, %26, %cst_26 {dimension_numbers = #tpu.dot_dimension_numbers<[1], [0], [0], [1], [0, 0, 1, 1], [], []>} : vector<16x32xf32>, vector<32x384xf32>, vector<16x384xf32> -> vector<16x384xf32>
    %28 = arith.addf %22, %27 : vector<16x384xf32>
    %c0_27 = arith.constant 0 : index
    %c0_28 = arith.constant 0 : index
    %c0_29 = arith.constant 0 : index
    %29 = vector.load %arg4[%c0_27, %c0_28, %c0_29] : memref<2x32x16xf32, #tpu.memory_space<vmem>>, vector<1x32x16xf32>
    %30 = vector.shape_cast %29 : vector<1x32x16xf32> to vector<32x16xf32>
    %c1_30 = arith.constant 1 : index
    %c0_31 = arith.constant 0 : index
    %c0_32 = arith.constant 0 : index
    %31 = vector.load %arg4[%c1_30, %c0_31, %c0_32] : memref<2x32x16xf32, #tpu.memory_space<vmem>>, vector<1x32x16xf32>
    %32 = vector.shape_cast %31 : vector<1x32x16xf32> to vector<32x16xf32>
    %33 = vector.extract_strided_slice %28 {offsets = [0, 0], sizes = [16, 128], strides = [1, 1]} : vector<16x384xf32> to vector<16x128xf32>
    %cst_33 = arith.constant dense<0.000000e+00> : vector<32x128xf32>
    %34 = tpu.matmul %30, %33, %cst_33 {dimension_numbers = #tpu.dot_dimension_numbers<[1], [0], [0], [1], [0, 0, 1, 1], [], []>} : vector<32x16xf32>, vector<16x128xf32>, vector<32x128xf32> -> vector<32x128xf32>
    %35 = vector.extract_strided_slice %28 {offsets = [0, 128], sizes = [16, 128], strides = [1, 1]} : vector<16x384xf32> to vector<16x128xf32>
    %cst_34 = arith.constant dense<0.000000e+00> : vector<32x128xf32>
    %36 = tpu.matmul %32, %35, %cst_34 {dimension_numbers = #tpu.dot_dimension_numbers<[1], [0], [0], [1], [0, 0, 1, 1], [], []>} : vector<32x16xf32>, vector<16x128xf32>, vector<32x128xf32> -> vector<32x128xf32>
    %37 = arith.addf %34, %36 : vector<32x128xf32>
    %38 = vector.broadcast %3 : vector<1x128xf32> to vector<32x128xf32>
    %39 = arith.addf %37, %38 : vector<32x128xf32>
    %40 = vector.extract_strided_slice %28 {offsets = [0, 256], sizes = [16, 128], strides = [1, 1]} : vector<16x384xf32> to vector<16x128xf32>
    %cst_35 = arith.constant dense<0.000000e+00> : vector<32x128xf32>
    %41 = tpu.matmul %30, %40, %cst_35 {dimension_numbers = #tpu.dot_dimension_numbers<[1], [0], [0], [1], [0, 0, 1, 1], [], []>} : vector<32x16xf32>, vector<16x128xf32>, vector<32x128xf32> -> vector<32x128xf32>
    %42 = vector.broadcast %4 : vector<1x128xf32> to vector<32x128xf32>
    %43 = arith.addf %41, %42 : vector<32x128xf32>
    %cst_36 = arith.constant dense<0.000000e+00> : vector<32x8xf32>
    %44 = tpu.matmul %39, %0, %cst_36 {dimension_numbers = #tpu.dot_dimension_numbers<[1], [0], [0], [1], [0, 0, 1, 1], [], []>} : vector<32x128xf32>, vector<128x8xf32>, vector<32x8xf32> -> vector<32x8xf32>
    %cst_37 = arith.constant dense<0.000000e+00> : vector<8xf32>
    %45 = vector.multi_reduction <add>, %44, %cst_37 [0] : vector<32x8xf32> to vector<8xf32>
    %46 = vector.shape_cast %45 : vector<8xf32> to vector<1x8xf32>
    %47 = arith.mulf %39, %39 : vector<32x128xf32>
    %cst_38 = arith.constant dense<0.000000e+00> : vector<32x8xf32>
    %48 = tpu.matmul %47, %0, %cst_38 {dimension_numbers = #tpu.dot_dimension_numbers<[1], [0], [0], [1], [0, 0, 1, 1], [], []>} : vector<32x128xf32>, vector<128x8xf32>, vector<32x8xf32> -> vector<32x8xf32>
    %cst_39 = arith.constant dense<0.000000e+00> : vector<8xf32>
    %49 = vector.multi_reduction <add>, %48, %cst_39 [0] : vector<32x8xf32> to vector<8xf32>
    %50 = vector.shape_cast %49 : vector<8xf32> to vector<1x8xf32>
    %cst_40 = arith.constant dense<0.000000e+00> : vector<1x128xf32>
    %51 = tpu.matmul %46, %1, %cst_40 {dimension_numbers = #tpu.dot_dimension_numbers<[1], [0], [0], [1], [0, 0, 1, 1], [], []>} : vector<1x8xf32>, vector<8x128xf32>, vector<1x128xf32> -> vector<1x128xf32>
    %cst_41 = arith.constant 5.120000e+02 : f32
    %52 = vector.broadcast %cst_41 : f32 to vector<1x128xf32>
    %53 = arith.divf %51, %52 : vector<1x128xf32>
    %cst_42 = arith.constant dense<0.000000e+00> : vector<1x128xf32>
    %54 = tpu.matmul %50, %1, %cst_42 {dimension_numbers = #tpu.dot_dimension_numbers<[1], [0], [0], [1], [0, 0, 1, 1], [], []>} : vector<1x8xf32>, vector<8x128xf32>, vector<1x128xf32> -> vector<1x128xf32>
    %cst_43 = arith.constant 5.120000e+02 : f32
    %55 = vector.broadcast %cst_43 : f32 to vector<1x128xf32>
    %56 = arith.divf %54, %55 : vector<1x128xf32>
    %57 = arith.mulf %53, %53 : vector<1x128xf32>
    %58 = arith.subf %56, %57 : vector<1x128xf32>
    %cst_44 = arith.constant 9.99999974E-6 : f32
    %59 = vector.broadcast %cst_44 : f32 to vector<1x128xf32>
    %60 = arith.addf %58, %59 : vector<1x128xf32>
    %61 = math.rsqrt %60 : vector<1x128xf32>
    %62 = arith.mulf %6, %61 : vector<1x128xf32>
    %63 = arith.mulf %53, %62 : vector<1x128xf32>
    %64 = arith.subf %7, %63 : vector<1x128xf32>
    %65 = vector.broadcast %62 : vector<1x128xf32> to vector<32x128xf32>
    %66 = arith.mulf %39, %65 : vector<32x128xf32>
    %67 = vector.broadcast %64 : vector<1x128xf32> to vector<32x128xf32>
    %68 = arith.addf %66, %67 : vector<32x128xf32>
    %cst_45 = arith.constant 0.000000e+00 : f32
    %69 = vector.broadcast %cst_45 : f32 to vector<32x128xf32>
    %70 = arith.cmpf oge, %68, %69 : vector<32x128xf32>
    %71 = vector.broadcast %12 : vector<1x128xf32> to vector<32x128xf32>
    %72 = arith.mulf %71, %68 : vector<32x128xf32>
    %73 = arith.select %70, %68, %72 : vector<32x128xi1>, vector<32x128xf32>
    %cst_46 = arith.constant dense<0.000000e+00> : vector<32x8xf32>
    %74 = tpu.matmul %43, %0, %cst_46 {dimension_numbers = #tpu.dot_dimension_numbers<[1], [0], [0], [1], [0, 0, 1, 1], [], []>} : vector<32x128xf32>, vector<128x8xf32>, vector<32x8xf32> -> vector<32x8xf32>
    %cst_47 = arith.constant dense<0.000000e+00> : vector<8xf32>
    %75 = vector.multi_reduction <add>, %74, %cst_47 [0] : vector<32x8xf32> to vector<8xf32>
    %76 = vector.shape_cast %75 : vector<8xf32> to vector<1x8xf32>
    %77 = arith.mulf %43, %43 : vector<32x128xf32>
    %cst_48 = arith.constant dense<0.000000e+00> : vector<32x8xf32>
    %78 = tpu.matmul %77, %0, %cst_48 {dimension_numbers = #tpu.dot_dimension_numbers<[1], [0], [0], [1], [0, 0, 1, 1], [], []>} : vector<32x128xf32>, vector<128x8xf32>, vector<32x8xf32> -> vector<32x8xf32>
    %cst_49 = arith.constant dense<0.000000e+00> : vector<8xf32>
    %79 = vector.multi_reduction <add>, %78, %cst_49 [0] : vector<32x8xf32> to vector<8xf32>
    %80 = vector.shape_cast %79 : vector<8xf32> to vector<1x8xf32>
    %cst_50 = arith.constant dense<0.000000e+00> : vector<1x128xf32>
    %81 = tpu.matmul %76, %1, %cst_50 {dimension_numbers = #tpu.dot_dimension_numbers<[1], [0], [0], [1], [0, 0, 1, 1], [], []>} : vector<1x8xf32>, vector<8x128xf32>, vector<1x128xf32> -> vector<1x128xf32>
    %cst_51 = arith.constant 5.120000e+02 : f32
    %82 = vector.broadcast %cst_51 : f32 to vector<1x128xf32>
    %83 = arith.divf %81, %82 : vector<1x128xf32>
    %cst_52 = arith.constant dense<0.000000e+00> : vector<1x128xf32>
    %84 = tpu.matmul %80, %1, %cst_52 {dimension_numbers = #tpu.dot_dimension_numbers<[1], [0], [0], [1], [0, 0, 1, 1], [], []>} : vector<1x8xf32>, vector<8x128xf32>, vector<1x128xf32> -> vector<1x128xf32>
    %cst_53 = arith.constant 5.120000e+02 : f32
    %85 = vector.broadcast %cst_53 : f32 to vector<1x128xf32>
    %86 = arith.divf %84, %85 : vector<1x128xf32>
    %87 = arith.mulf %83, %83 : vector<1x128xf32>
    %88 = arith.subf %86, %87 : vector<1x128xf32>
    %cst_54 = arith.constant 9.99999974E-6 : f32
    %89 = vector.broadcast %cst_54 : f32 to vector<1x128xf32>
    %90 = arith.addf %88, %89 : vector<1x128xf32>
    %91 = math.rsqrt %90 : vector<1x128xf32>
    %92 = arith.mulf %10, %91 : vector<1x128xf32>
    %93 = arith.mulf %83, %92 : vector<1x128xf32>
    %94 = arith.subf %11, %93 : vector<1x128xf32>
    %95 = vector.broadcast %92 : vector<1x128xf32> to vector<32x128xf32>
    %96 = arith.mulf %43, %95 : vector<32x128xf32>
    %97 = vector.broadcast %94 : vector<1x128xf32> to vector<32x128xf32>
    %98 = arith.addf %96, %97 : vector<32x128xf32>
    %cst_55 = arith.constant 0.000000e+00 : f32
    %99 = vector.broadcast %cst_55 : f32 to vector<2x26x128xf32>
    %c0_56 = arith.constant 0 : index
    %c0_57 = arith.constant 0 : index
    %c0_58 = arith.constant 0 : index
    %100 = vector.load %arg10[%c0_56, %c0_57, %c0_58] : memref<2x26x128xf32, #tpu.memory_space<vmem>>, vector<2x26x128xf32>
    tpu.vector_store %arg10[%c0_56, %c0_57, %c0_58], %99 {strides = array<i32>} : memref<2x26x128xf32, #tpu.memory_space<vmem>>, vector<2x26x128xf32>,
    %101 = vector.shape_cast %73 : vector<32x128xf32> to vector<2x16x128xf32>
    %c0_59 = arith.constant 0 : index
    %c8 = arith.constant 8 : index
    %c0_60 = arith.constant 0 : index
    %102 = vector.load %arg10[%c0_59, %c8, %c0_60] : memref<2x26x128xf32, #tpu.memory_space<vmem>>, vector<2x16x128xf32>
    tpu.vector_store %arg10[%c0_59, %c8, %c0_60], %101 {strides = array<i32>} : memref<2x26x128xf32, #tpu.memory_space<vmem>>, vector<2x16x128xf32>,
    %c0_61 = arith.constant 0 : index
    %c7 = arith.constant 7 : index
    %c0_62 = arith.constant 0 : index
    %103 = vector.load %arg10[%c0_61, %c7, %c0_62] : memref<2x26x128xf32, #tpu.memory_space<vmem>>, vector<2x16x128xf32>
    %104 = vector.shape_cast %103 : vector<2x16x128xf32> to vector<32x128xf32>
    %c0_63 = arith.constant 0 : index
    %c0_64 = arith.constant 0 : index
    %c0_65 = arith.constant 0 : index
    %105 = vector.load %arg3[%c0_63, %c0_64, %c0_65] : memref<3x128x128xf32, #tpu.memory_space<vmem>>, vector<1x128x128xf32>
    %106 = vector.shape_cast %105 : vector<1x128x128xf32> to vector<128x128xf32>
    %cst_66 = arith.constant dense<0.000000e+00> : vector<32x128xf32>
    %107 = tpu.matmul %104, %106, %cst_66 {dimension_numbers = #tpu.dot_dimension_numbers<[1], [0], [0], [1], [0, 0, 1, 1], [], []>} : vector<32x128xf32>, vector<128x128xf32>, vector<32x128xf32> -> vector<32x128xf32>
    %108 = vector.broadcast %5 : vector<1x128xf32> to vector<32x128xf32>
    %109 = arith.addf %108, %107 : vector<32x128xf32>
    %c0_67 = arith.constant 0 : index
    %c8_68 = arith.constant 8 : index
    %c0_69 = arith.constant 0 : index
    %110 = vector.load %arg10[%c0_67, %c8_68, %c0_69] : memref<2x26x128xf32, #tpu.memory_space<vmem>>, vector<2x16x128xf32>
    %111 = vector.shape_cast %110 : vector<2x16x128xf32> to vector<32x128xf32>
    %c1_70 = arith.constant 1 : index
    %c0_71 = arith.constant 0 : index
    %c0_72 = arith.constant 0 : index
    %112 = vector.load %arg3[%c1_70, %c0_71, %c0_72] : memref<3x128x128xf32, #tpu.memory_space<vmem>>, vector<1x128x128xf32>
    %113 = vector.shape_cast %112 : vector<1x128x128xf32> to vector<128x128xf32>
    %cst_73 = arith.constant dense<0.000000e+00> : vector<32x128xf32>
    %114 = tpu.matmul %111, %113, %cst_73 {dimension_numbers = #tpu.dot_dimension_numbers<[1], [0], [0], [1], [0, 0, 1, 1], [], []>} : vector<32x128xf32>, vector<128x128xf32>, vector<32x128xf32> -> vector<32x128xf32>
    %115 = arith.addf %109, %114 : vector<32x128xf32>
    %c0_74 = arith.constant 0 : index
    %c9 = arith.constant 9 : index
    %c0_75 = arith.constant 0 : index
    %116 = vector.load %arg10[%c0_74, %c9, %c0_75] : memref<2x26x128xf32, #tpu.memory_space<vmem>>, vector<2x16x128xf32>
    %117 = vector.shape_cast %116 : vector<2x16x128xf32> to vector<32x128xf32>
    %c2 = arith.constant 2 : index
    %c0_76 = arith.constant 0 : index
    %c0_77 = arith.constant 0 : index
    %118 = vector.load %arg3[%c2, %c0_76, %c0_77] : memref<3x128x128xf32, #tpu.memory_space<vmem>>, vector<1x128x128xf32>
    %119 = vector.shape_cast %118 : vector<1x128x128xf32> to vector<128x128xf32>
    %cst_78 = arith.constant dense<0.000000e+00> : vector<32x128xf32>
    %120 = tpu.matmul %117, %119, %cst_78 {dimension_numbers = #tpu.dot_dimension_numbers<[1], [0], [0], [1], [0, 0, 1, 1], [], []>} : vector<32x128xf32>, vector<128x128xf32>, vector<32x128xf32> -> vector<32x128xf32>
    %121 = arith.addf %115, %120 : vector<32x128xf32>
    %cst_79 = arith.constant dense<0.000000e+00> : vector<32x8xf32>
    %122 = tpu.matmul %121, %0, %cst_79 {dimension_numbers = #tpu.dot_dimension_numbers<[1], [0], [0], [1], [0, 0, 1, 1], [], []>} : vector<32x128xf32>, vector<128x8xf32>, vector<32x8xf32> -> vector<32x8xf32>
    %cst_80 = arith.constant dense<0.000000e+00> : vector<8xf32>
    %123 = vector.multi_reduction <add>, %122, %cst_80 [0] : vector<32x8xf32> to vector<8xf32>
    %124 = vector.shape_cast %123 : vector<8xf32> to vector<1x8xf32>
    %125 = arith.mulf %121, %121 : vector<32x128xf32>
    %cst_81 = arith.constant dense<0.000000e+00> : vector<32x8xf32>
    %126 = tpu.matmul %125, %0, %cst_81 {dimension_numbers = #tpu.dot_dimension_numbers<[1], [0], [0], [1], [0, 0, 1, 1], [], []>} : vector<32x128xf32>, vector<128x8xf32>, vector<32x8xf32> -> vector<32x8xf32>
    %cst_82 = arith.constant dense<0.000000e+00> : vector<8xf32>
    %127 = vector.multi_reduction <add>, %126, %cst_82 [0] : vector<32x8xf32> to vector<8xf32>
    %128 = vector.shape_cast %127 : vector<8xf32> to vector<1x8xf32>
    %cst_83 = arith.constant dense<0.000000e+00> : vector<1x128xf32>
    %129 = tpu.matmul %124, %1, %cst_83 {dimension_numbers = #tpu.dot_dimension_numbers<[1], [0], [0], [1], [0, 0, 1, 1], [], []>} : vector<1x8xf32>, vector<8x128xf32>, vector<1x128xf32> -> vector<1x128xf32>
    %cst_84 = arith.constant 5.120000e+02 : f32
    %130 = vector.broadcast %cst_84 : f32 to vector<1x128xf32>
    %131 = arith.divf %129, %130 : vector<1x128xf32>
    %cst_85 = arith.constant dense<0.000000e+00> : vector<1x128xf32>
    %132 = tpu.matmul %128, %1, %cst_85 {dimension_numbers = #tpu.dot_dimension_numbers<[1], [0], [0], [1], [0, 0, 1, 1], [], []>} : vector<1x8xf32>, vector<8x128xf32>, vector<1x128xf32> -> vector<1x128xf32>
    %cst_86 = arith.constant 5.120000e+02 : f32
    %133 = vector.broadcast %cst_86 : f32 to vector<1x128xf32>
    %134 = arith.divf %132, %133 : vector<1x128xf32>
    %135 = arith.mulf %131, %131 : vector<1x128xf32>
    %136 = arith.subf %134, %135 : vector<1x128xf32>
    %cst_87 = arith.constant 9.99999974E-6 : f32
    %137 = vector.broadcast %cst_87 : f32 to vector<1x128xf32>
    %138 = arith.addf %136, %137 : vector<1x128xf32>
    %139 = math.rsqrt %138 : vector<1x128xf32>
    %140 = arith.mulf %8, %139 : vector<1x128xf32>
    %141 = arith.mulf %131, %140 : vector<1x128xf32>
    %142 = arith.subf %9, %141 : vector<1x128xf32>
    %143 = vector.broadcast %140 : vector<1x128xf32> to vector<32x128xf32>
    %144 = arith.mulf %121, %143 : vector<32x128xf32>
    %145 = vector.broadcast %142 : vector<1x128xf32> to vector<32x128xf32>
    %146 = arith.addf %144, %145 : vector<32x128xf32>
    %cst_88 = arith.constant 0.000000e+00 : f32
    %147 = vector.broadcast %cst_88 : f32 to vector<32x128xf32>
    %148 = arith.cmpf oge, %146, %147 : vector<32x128xf32>
    %149 = vector.broadcast %13 : vector<1x128xf32> to vector<32x128xf32>
    %150 = arith.mulf %149, %146 : vector<32x128xf32>
    %151 = arith.select %148, %146, %150 : vector<32x128xi1>, vector<32x128xf32>
    %152 = arith.addf %151, %98 : vector<32x128xf32>
    %cst_89 = arith.constant 0.000000e+00 : f32
    %153 = vector.broadcast %cst_89 : f32 to vector<32x128xf32>
    %154 = arith.cmpf oge, %152, %153 : vector<32x128xf32>
    %cst_90 = arith.constant 2.500000e-01 : f32
    %155 = vector.broadcast %cst_90 : f32 to vector<32x128xf32>
    %156 = arith.mulf %155, %152 : vector<32x128xf32>
    %157 = arith.select %154, %152, %156 : vector<32x128xi1>, vector<32x128xf32>
    %c0_91 = arith.constant 0 : index
    %c0_92 = arith.constant 0 : index
    %158 = vector.load %arg8[%c0_91, %c0_92] : memref<32x128xf32, #tpu.memory_space<vmem>>, vector<32x128xf32>
    tpu.vector_store %arg8[%c0_91, %c0_92], %157 {strides = array<i32>} : memref<32x128xf32, #tpu.memory_space<vmem>>, vector<32x128xf32>,
    return
  }
  func.func @transform_0(%arg0: i32) -> (i32, i32, i32) {
    %c0_i32 = arith.constant 0 : i32
    %c0_i32_0 = arith.constant 0 : i32
    %c0_i32_1 = arith.constant 0 : i32
    %c0_i32_2 = arith.constant 0 : i32
    return %c0_i32, %c0_i32_0, %c0_i32_1 : i32, i32, i32
  }
  func.func @transform_1(%arg0: i32) -> (i32, i32, i32) {
    %c0_i32 = arith.constant 0 : i32
    %c0_i32_0 = arith.constant 0 : i32
    %c0_i32_1 = arith.constant 0 : i32
    %c0_i32_2 = arith.constant 0 : i32
    return %c0_i32, %c0_i32_0, %c0_i32_1 : i32, i32, i32
  }
  func.func @transform_2(%arg0: i32) -> (i32, i32, i32) {
    %c0_i32 = arith.constant 0 : i32
    %c0_i32_0 = arith.constant 0 : i32
    %c0_i32_1 = arith.constant 0 : i32
    %c0_i32_2 = arith.constant 0 : i32
    return %c0_i32, %c0_i32_0, %c0_i32_1 : i32, i32, i32
  }
  func.func @transform_3(%arg0: i32) -> (i32, i32, i32) {
    %c0_i32 = arith.constant 0 : i32
    %c0_i32_0 = arith.constant 0 : i32
    %c0_i32_1 = arith.constant 0 : i32
    %c0_i32_2 = arith.constant 0 : i32
    return %c0_i32, %c0_i32_0, %c0_i32_1 : i32, i32, i32
  }
  func.func @transform_4(%arg0: i32) -> (i32, i32) {
    %c0_i32 = arith.constant 0 : i32
    %c0_i32_0 = arith.constant 0 : i32
    %c0_i32_1 = arith.constant 0 : i32
    return %c0_i32, %c0_i32_0 : i32, i32
  }
  func.func @transform_5(%arg0: i32) -> (i32, i32) {
    %c0_i32 = arith.constant 0 : i32
    %c0_i32_0 = arith.constant 0 : i32
    %c0_i32_1 = arith.constant 0 : i32
    return %c0_i32, %c0_i32_0 : i32, i32
  }
  func.func @transform_6(%arg0: i32) -> (i32, i32) {
    %c0_i32 = arith.constant 0 : i32
    %c0_i32_0 = arith.constant 0 : i32
    %c0_i32_1 = arith.constant 0 : i32
    return %c0_i32, %c0_i32_0 : i32, i32
  }
  func.func @transform_7(%arg0: i32) -> (i32, i32) {
    %c0_i32 = arith.constant 0 : i32
    %c0_i32_0 = arith.constant 0 : i32
    %c0_i32_1 = arith.constant 0 : i32
    return %c0_i32, %c0_i32_0 : i32, i32
  }
}

</mosaic_0001>

<bundles_post_ra>
// kernel: tpu_custom_call.1
= control target key start
LH: loop header
LB: loop body
LE: loop exit
PB: predicated region body
PF: predicated region fallthrough
CT: control target
= control target key end

     0   :  { %12 = vsyncpa [#allocation5], 0  ;;  %s3948_s0 = inlined_call_operand.vmem [shape: f32[2,8,32], index: 0, kind: input, shape index: {}]   ;;  %s3949_s1 = inlined_call_operand.vmem [shape: f32[2,32,384], index: 1, kind: input, shape index: {}]   ;;  %s3950_s2 = inlined_call_operand.hbm [shape: f32[3,128,128], index: 2, kind: input, shape index: {}]   ;;  %s3951_s3 = inlined_call_operand.vmem [shape: f32[2,32,16], index: 3, kind: input, shape index: {}]   ;;  %s3952_s4 = inlined_call_operand.vmem [shape: f32[11,128], index: 4, kind: input, shape index: {}]   ;;  %s3953_s5 = inlined_call_operand.vmem [shape: f32[128,8], index: 5, kind: input, shape index: {}]   ;;  %s3954_s6 = inlined_call_operand.vmem [shape: f32[8,128], index: 6, kind: input, shape index: {}]   ;;  %s3955_s7 = inlined_call_operand.hbm [shape: f32[32,128], index: 7, kind: output, shape index: {}]  }
   0x1   :  { %13 = vsyncpa [#allocation6], 0  ;;  %s3371_s24 = smov [#allocation4]   ;;  %s3323_s28 = scalar_lea.hbm %s3950_s2, 6144 }
   0x2   :  { %s23_s25 = sshll.u32 %s3371_s24, 4  ;;  %p3324_p0 = scmp.ne.s32.totalorder %s3950_s2, %s3323_s28  ;;  %s24_s25 = int_to_ptr.vmem [resolvable:$true] %s23_s25 }
   0x3   :  { %p3327_p1 = scmp.lt.u32.totalorder %s3323_s28, %s3950_s2 }
   0x5   :  { %p3329_p2 = pnand %p3327_p1, %p3324_p0 }
   0x7   :  { %3332 = shalt.err (!%p3329_p2)
}
   0x8   :  { %s3333_s10 = scalar_lea.vmem %s24_s25, 6144  ;;  %p3338_p4 = scmp.lt.s32.totalorder %s24_s25, %s24_s25 }
   0x9   :  { %p3334_p3 = scmp.ne.s32.totalorder %s24_s25, %s3333_s10  ;;  %p3339_p5 = scmp.lt.s32.totalorder %s3333_s10, %s3333_s10 }
   0xb   :  { %p3340_p6 = por %p3339_p5, %p3338_p4 }
   0xd   :  { %p3341_p7 = pnand %p3340_p6, %p3334_p3 }
   0xf   :  { %3344 = shalt.err (!%p3341_p7)
}
  0x10   :  { %s3372_s11 = smov 128   ;;  %s3373_s12 = smov 8  }
  0x11   :  { %29 = dma.hbm_to_vmem [thread:$0]  %s3950_s2, 6144, %s24_s25, [#allocation5], %s3372_s11, %s3372_s11, %s3373_s12  }
  0x12   :  { %3367 = dma.done.wait [#allocation5], 6144  }
  0x13   :  { %3368 = vsyncadd [#allocation5], 4294961152  ;;  %vm60_vm0 = vcmask 261120   ;;  %v3374_v0 = vmov 0.0   ;;  %v2269_v1 = vld [vmem:[%s3949_s1 + $0x68] sm:$0xff]  ;;  %v2272_v2 = vld [vmem:[%s3949_s1 + $0x80] sm:$0xff] }
  0x14   :  { %168 = vmatprep.mubr.f32.mxu1 %v3374_v0  ;;  %1490 = vst [vmem:[#allocation3] sm:$0xff] %v3374_v0  ;;  %1493 = vst [vmem:[#allocation3 + $0x18] sm:$0x3] %v3374_v0  ;;  %326 = vmatprep.mubr.f32.mxu0 %v3374_v0  ;;  %v72_v3 = vld [vmem:[%s3949_s1 + $0x8] sm:$0xff]  ;;  %v2956_v4 = vpack.c.bf16 %v2272_v2, %v2269_v1  ;;  %v75_v5 = vld [vmem:[%s3949_s1 + $0x20] sm:$0xff]  ;;  %vm423_vm1 = vcmask 130048  }
  0x15   :  { %1494 = vst [vmem:[#allocation3 + $0x20] sm:$0xff] %v3374_v0  ;;  %1497 = vst [vmem:[#allocation3 + $0x38] sm:$0x3] %v3374_v0  ;;  %v2268_v6 = vld [vmem:[%s3949_s1 + $0x60] sm:$0xff]  ;;  %v2271_v7 = vld [vmem:[%s3949_s1 + $0x78] sm:$0xff]  ;;  %v2972_v8 = vpack.c.bf16 %v75_v5, %v72_v3  ;;  %vm3375_vm2 = vmmov 0  }
  0x16   :  { %61 = vst.msk [vmem:[#allocation2] sm:$0xff] %vm60_vm0, %v3374_v0  ;;  %62 = vst.msk [vmem:[#allocation2 + $0x8] sm:$0xff] %vm60_vm0, %v3374_v0  ;;  %v2958_v9 = vpack.c.bf16 %v2271_v7, %v2268_v6  ;;  %v71_v10 = vld [vmem:[%s3949_s1] sm:$0xff]  ;;  %v74_v11 = vld [vmem:[%s3949_s1 + $0x18] sm:$0xff]  ;;  %2957 = vmatprep.subr.bf16.mxu1 %v2956_v4  ;;  %vm800_vm3 = vcmask 64512  }
  0x17   :  { %63 = vst.msk [vmem:[#allocation2 + $0x10] sm:$0xff] %vm60_vm0, %v3374_v0  ;;  %64 = vst.msk [vmem:[#allocation2 + $0x18] sm:$0xff] %vm60_vm0, %v3374_v0  ;;  %v2275_v12 = vld [vmem:[%s3949_s1 + $0x98] sm:$0xff]  ;;  %v2974_v13 = vpack.c.bf16 %v74_v11, %v71_v10  ;;  %v2278_v14 = vld [vmem:[%s3949_s1 + $0xb0] sm:$0xff]  ;;  %2973 = vmatprep.subr.bf16.mxu0 %v2972_v8 }
  0x18   :  { %v78_v15 = vld [vmem:[%s3949_s1 + $0x38] sm:$0xff]  ;;  %v81_v16 = vld [vmem:[%s3949_s1 + $0x50] sm:$0xff]  ;;  %2959 = vmatpush1.bf16.msra.mxu1 %v2958_v9  ;;  %v2960_v17 = vpack.c.bf16 %v2278_v14, %v2275_v12  ;;  %v2277_v20 = vld [vmem:[%s3949_s1 + $0xa8] sm:$0xff] }
  0x19   :  { %v2976_v18 = vpack.c.bf16 %v81_v16, %v78_v15  ;;  %v2274_v19 = vld [vmem:[%s3949_s1 + $0x90] sm:$0xff]  ;;  %2975 = vmatpush1.bf16.msra.mxu0 %v2974_v13  ;;  %v80_v23 = vld [vmem:[%s3949_s1 + $0x48] sm:$0xff]  ;;  %v65_v24 = vld [vmem:[%s3948_s0] sm:$0xff] }
  0x1a   :  { %v77_v21 = vld [vmem:[%s3949_s1 + $0x30] sm:$0xff]  ;;  %v2962_v22 = vpack.c.bf16 %v2277_v20, %v2274_v19  ;;  %v66_v25 = vld [vmem:[%s3948_s0 + $0x8] sm:$0xff]  ;;  %2961 = vmatprep.subr.bf16.mxu1 %v2960_v17  ;;  %67 = vst.msk [vmem:[#allocation2] sm:$0xff] %vm60_vm0, %v65_v24  ;;  %v2276_v30 = vld [vmem:[%s3949_s1 + $0xa0] sm:$0xff] }
  0x1b   :  { %2977 = vmatprep.subr.bf16.mxu0 %v2976_v18  ;;  %v2978_v26 = vpack.c.bf16 %v80_v23, %v77_v21  ;;  %68 = vst.msk [vmem:[#allocation2 + $0x10] sm:$0xff] %vm60_vm0, %v66_v25  ;;  %v2270_v27 = vld [vmem:[%s3949_s1 + $0x70] sm:$0xff]  ;;  %v2273_v28 = vld [vmem:[%s3949_s1 + $0x88] sm:$0xff]  ;;  %v2279_v31 = vld [vmem:[%s3949_s1 + $0xb8] sm:$0xff] }
  0x1c   :  { %v2964_v29 = vpack.c.bf16 %v2273_v28, %v2270_v27  ;;  %2963 = vmatpush1.bf16.msra.mxu1 %v2962_v22  ;;  %v2968_v34 = vpack.c.bf16 %v2279_v31, %v2276_v30  ;;  %v73_v35 = vld [vmem:[%s3949_s1 + $0x10] sm:$0xff]  ;;  %v76_v36 = vld [vmem:[%s3949_s1 + $0x28] sm:$0xff]  ;;  %v79_v40 = vld [vmem:[%s3949_s1 + $0x40] sm:$0xff] }
  0x1d   :  { %2979 = vmatpush1.bf16.msra.mxu0 %v2978_v26  ;;  %v2980_v39 = vpack.c.bf16 %v76_v36, %v73_v35  ;;  %v82_v41 = vld [vmem:[%s3949_s1 + $0x58] sm:$0xff]  ;;  %v2288_v43 = vld [vmem:[%s3951_s3 + $0x20] sm:$0xff]  ;;  %v2289_v59 = vld [vmem:[%s3951_s3 + $0x28] sm:$0xff] }
  0x1e   :  { %2965 = vmatprep.subr.bf16.mxu1 %v2964_v29  ;;  %v2984_v42 = vpack.c.bf16 %v82_v41, %v79_v40  ;;  %v414_v44 = vld [vmem:[%s3951_s3] sm:$0xff]  ;;  %v42_v61 = vld [vmem:[%s3953_s5 + $0x8] sm:$0xff]  ;;  %v2290_v62 = vld [vmem:[%s3951_s3 + $0x30] sm:$0xff] }
  0x1f   :  { %v41_v60 = vld [vmem:[%s3953_s5] sm:$0xff]  ;;  %v2291_v1 = vld [vmem:[%s3951_s3 + $0x38] sm:$0xff]  ;;  %v415_v4 = vld [vmem:[%s3951_s3 + $0x8] sm:$0xff] }
  0x20   :  { %v3557_v63 = vpack.c.bf16 %v42_v61, %v41_v60  ;;  %v416_v6 = vld [vmem:[%s3951_s3 + $0x10] sm:$0xff]  ;;  %v44_v8 = vld [vmem:[%s3953_s5 + $0x18] sm:$0xff]  ;;  %v45_v11 = vld [vmem:[%s3953_s5 + $0x20] sm:$0xff] }
  0x21   :  { %v83_v32 = vld [vmem:[#allocation2 + $0x1] sm:$0xff]  ;;  %v43_v7 = vld [vmem:[%s3953_s5 + $0x10] sm:$0xff]  ;;  %v417_v9 = vld [vmem:[%s3951_s3 + $0x18] sm:$0xff] }
  0x22   :  { %v69_v33 = vld [vmem:[#allocation2] sm:$0xff]  ;;  %2280 = vmatmul.mubr.msk.f32.vlgmr.msra.gmra.mrb[0].mxu1 %vm60_vm0, %v83_v32  ;;  %v84_v37 = vld [vmem:[#allocation2 + $0x11] sm:$0xff]  ;;  %v3584_v10 = vpack.c.bf16 %v44_v8, %v43_v7  ;;  %v46_v12 = vld [vmem:[%s3953_s5 + $0x28] sm:$0xff] }
  0x23   :  { %2284 = vmatmul.mubr.msk.f32.vlgmr.msra.gmra.mrb[0].mxu0 %vm60_vm0, %v69_v33  ;;  %174 = vmatprep.mubr.f32.mxu1 %v3374_v0  ;;  %v70_v38 = vld [vmem:[#allocation2 + $0x10] sm:$0xff]  ;;  %v3598_v13 = vpack.c.bf16 %v46_v12, %v45_v11  ;;  %v48_v15 = vld [vmem:[%s3953_s5 + $0x38] sm:$0xff]  ;;  %v49_v17 = vld [vmem:[%s3953_s5 + $0x40] sm:$0xff] }
  0x24   :  { %332 = vmatprep.mubr.f32.mxu0 %v3374_v0  ;;  %2967 = vmatpush3.bf16.msra.mxu1 %v2964_v29  ;;  %v47_v14 = vld [vmem:[%s3953_s5 + $0x30] sm:$0xff]  ;;  %v50_v18 = vld [vmem:[%s3953_s5 + $0x48] sm:$0xff]  ;;  %v52_v21 = vld [vmem:[%s3953_s5 + $0x58] sm:$0xff]  ;;  %v618_v29 = vlaneseq }
  0x25   :  { %2969 = vmatprep.subr.bf16.mxu1 %v2968_v34  ;;  %v3611_v16 = vpack.c.bf16 %v48_v15, %v47_v14  ;;  %v3623_v19 = vpack.c.bf16 %v50_v18, %v49_v17  ;;  %v51_v20 = vld [vmem:[%s3953_s5 + $0x50] sm:$0xff]  ;;  %v53_v23 = vld [vmem:[%s3953_s5 + $0x60] sm:$0xff]  ;;  %v54_v24 = vld [vmem:[%s3953_s5 + $0x68] sm:$0xff] }
  0x26   :  { %2281 = vmatmul.mubr.msk.f32.gmra.mrb[2].mxu1 %vm60_vm0, %v84_v37  ;;  %v3635_v22 = vpack.c.bf16 %v52_v21, %v51_v20  ;;  %v3647_v25 = vpack.c.bf16 %v54_v24, %v53_v23  ;;  %v55_v26 = vld [vmem:[%s3953_s5 + $0x70] sm:$0xff]  ;;  %v56_v27 = vld [vmem:[%s3953_s5 + $0x78] sm:$0xff]  ;;  %v3670_v30 = vshrl.u32 %v618_v29, 7 }
  0x27   :  { %2285 = vmatmul.mubr.msk.f32.gmra.mrb[2].mxu0 %vm60_vm0, %v70_v38  ;;  %2540 = vmatprep.mubr.msk.f32.mxu1 %vm60_vm0, %v83_v32  ;;  %v3662_v28 = vpack.c.bf16 %v56_v27, %v55_v26  ;;  %v3676_v32 = vld [vmem:[%s3952_s4] sm:$0xff] }
  0x28   :  { %2971 = vmatpush3.bf16.msra.mxu1 %v2968_v34  ;;  %2578 = vmatprep.mubr.msk.f32.mxu0 %vm423_vm1, %v414_v44  ;;  %v620_v31 = vsub.s32 0, %v3670_v30  ;;  %v628_v35 = vsub.s32 1, %v3670_v30 }
  0x29   :  { %2981 = vmatprep.subr.bf16.mxu1 %v2980_v39 }
  0x2b   :  { %2541 = vmatmul.mubr.msk.f32.vlgmr.msra.gmra.mrb[4].mxu1 %vm60_vm0, %v84_v37 }
  0x2c   :  { %2983 = vmatpush3.bf16.msra.mxu1 %v2980_v39  ;;  %2551 = vmatprep.mubr.msk.f32.mxu1 %vm60_vm0, %v69_v33  ;;  %v621_v33 = vrot.slane %v3676_v32, %v620_v31 }
  0x2d   :  { %2985 = vmatprep.subr.bf16.mxu1 %v2984_v42 }
  0x30   :  { %2987 = vmatpush3.bf16.msra.mxu1 %v2984_v42  ;;  %v629_v42 = vrot.slane %v3676_v32, %v628_v35 }
  0x33   :  { %2552 = vmatmul.mubr.msk.f32.vlgmr.msra.gmra.mrb[4].mxu1 %vm60_vm0, %v70_v38 }
  0x34   :  { %2558 = vmatprep.mubr.msk.f32.mxu1 %vm423_vm1, %v2288_v43 }
  0xf5   :  { %v170_v45 = vpop.f32.mrb[0].mxu1 }
  0xf6   :  { %v328_v46 = vpop.f32.mrb[0].mxu0  ;;  %v172_v48 = vpop.f32.mrb[1].mxu1 }
  0xf7   :  { %v329_v47 = vadd.f32 %v328_v46, %v170_v45  ;;  %v330_v49 = vpop.f32.mrb[1].mxu0 }
  0xf8   :  { %v331_v50 = vadd.f32 %v330_v49, %v172_v48 }
  0xf9   :  { %v176_v51 = vpop.f32.mrb[2].mxu1 }
  0xfa   :  { %v334_v52 = vpop.f32.mrb[2].mxu0  ;;  %v178_v54 = vpop.f32.mrb[3].mxu1 }
  0xfb   :  { %v335_v53 = vadd.f32 %v334_v52, %v176_v51  ;;  %v336_v55 = vpop.f32.mrb[3].mxu0 }
  0xfc   :  { %v337_v56 = vadd.f32 %v336_v55, %v178_v54 }
  0xfd   :  { %v2992_v57 = vpack.c.bf16 %v335_v53, %v329_v47 }
  0xfe   :  { %v2988_v58 = vpack.c.bf16 %v337_v56, %v331_v50  ;;  %v3736_v56 = vld [vmem:[%s3954_s6] sm:$0xff] }
 0x100   :  { %2989 = vmatprep.subr.bf16.mxu1 %v2988_v58 }
 0x101   :  { %2991 = vmatpush3.bf16.msra.mxu1 %v2988_v58 }
 0x102   :  { %2993 = vmatprep.subr.bf16.mxu1 %v2992_v57 }
 0x104   :  { %2559 = vmatmul.mubr.msk.f32.vlgmr.msra.gmra.mrb[6].mxu1 %vm423_vm1, %v2289_v59 }
 0x105   :  { %2995 = vmatpush3.bf16.msra.mxu1 %v2992_v57  ;;  %2561 = vmatprep.mubr.msk.f32.mxu1 %vm423_vm1, %v2290_v62 }
 0x106   :  { %3033 = vmatprep.subr.bf16.mxu1 %v3557_v63  ;;  %v2553_v2 = vpop.f32.mrb[4].mxu1 }
 0x107   :  { %v405_v3 = vpop.f32.mrb[5].mxu1 }
 0x108   :  { %2562 = vmatmul.mubr.msk.f32.gmra.mrb[8].mxu1 %vm423_vm1, %v2291_v1  ;;  %v2996_v5 = vpack.c.bf16 %v2553_v2, %v405_v3 }
 0x109   :  { %2568 = vmatprep.mubr.msk.f32.mxu1 %vm423_vm1, %v414_v44 }
 0x10a   :  { %2997 = vmatprep.subr.bf16.mxu0 %v2996_v5 }
 0x10b   :  { %2999 = vmatpush3.bf16.msra.mxu0 %v2996_v5 }
 0x10c   :  { %2569 = vmatmul.mubr.msk.f32.vlgmr.msra.gmra.mrb[6].mxu1 %vm423_vm1, %v415_v4  ;;  %3001 = vmatprep.subr.bf16.mxu0 %v3557_v63 }
 0x10d   :  { %2571 = vmatprep.mubr.msk.f32.mxu1 %vm423_vm1, %v416_v6  ;;  %3035 = vmatpush3.bf16.msra.mxu1 %v3557_v63 }
 0x10e   :  { %2579 = vmatmul.mubr.msk.f32.vlgmr.msra.gmra.mrb[4].mxu0 %vm423_vm1, %v415_v4  ;;  %3037 = vmatprep.subr.bf16.mxu1 %v3584_v10 }
 0x10f   :  { %2581 = vmatprep.mubr.msk.f32.mxu0 %vm423_vm1, %v416_v6  ;;  %3003 = vmatpush3.bf16.msra.mxu0 %v3557_v63 }
 0x110   :  { %2572 = vmatmul.mubr.msk.f32.gmra.mrb[8].mxu1 %vm423_vm1, %v417_v9  ;;  %3005 = vmatprep.subr.bf16.mxu0 %v3584_v10 }
 0x111   :  { %3039 = vmatpush3.bf16.msra.mxu1 %v3584_v10 }
 0x112   :  { %2582 = vmatmul.mubr.msk.f32.gmra.mrb[6].mxu0 %vm423_vm1, %v417_v9  ;;  %3041 = vmatprep.subr.bf16.mxu1 %v3598_v13 }
 0x113   :  { %3007 = vmatpush3.bf16.msra.mxu0 %v3584_v10 }
 0x114   :  { %3009 = vmatprep.subr.bf16.mxu0 %v3598_v13 }
 0x115   :  { %3043 = vmatpush3.bf16.msra.mxu1 %v3598_v13 }
 0x116   :  { %3045 = vmatprep.subr.bf16.mxu1 %v3611_v16 }
 0x117   :  { %3011 = vmatpush3.bf16.msra.mxu0 %v3598_v13 }
 0x118   :  { %3013 = vmatprep.subr.bf16.mxu0 %v3611_v16 }
 0x119   :  { %3047 = vmatpush3.bf16.msra.mxu1 %v3611_v16 }
 0x11a   :  { %3049 = vmatprep.subr.bf16.mxu1 %v3623_v19 }
 0x11b   :  { %3015 = vmatpush3.bf16.msra.mxu0 %v3611_v16 }
 0x11c   :  { %3017 = vmatprep.subr.bf16.mxu0 %v3623_v19 }
 0x11d   :  { %3051 = vmatpush3.bf16.msra.mxu1 %v3623_v19 }
 0x11e   :  { %3053 = vmatprep.subr.bf16.mxu1 %v3635_v22 }
 0x11f   :  { %3019 = vmatpush3.bf16.msra.mxu0 %v3623_v19 }
 0x120   :  { %3021 = vmatprep.subr.bf16.mxu0 %v3635_v22 }
 0x121   :  { %3055 = vmatpush3.bf16.msra.mxu1 %v3635_v22 }
 0x122   :  { %3057 = vmatprep.subr.bf16.mxu1 %v3647_v25 }
 0x123   :  { %3023 = vmatpush3.bf16.msra.mxu0 %v3635_v22 }
 0x124   :  { %3025 = vmatprep.subr.bf16.mxu0 %v3647_v25 }
 0x125   :  { %3059 = vmatpush3.bf16.msra.mxu1 %v3647_v25 }
 0x126   :  { %3061 = vmatprep.subr.bf16.mxu1 %v3662_v28 }
 0x127   :  { %3027 = vmatpush3.bf16.msra.mxu0 %v3647_v25 }
 0x128   :  { %3029 = vmatprep.subr.bf16.mxu0 %v3662_v28 }
 0x129   :  { %3063 = vmatpush3.bf16.msra.mxu1 %v3662_v28 }
 0x12a   :  { %3065 = vmatprep.subr.bf16.mxu1 %v3557_v63 }
 0x12b   :  { %3031 = vmatpush3.bf16.msra.mxu0 %v3662_v28 }
 0x12c   :  { %2660 = vmatprep.subr.mxu0 %v3374_v0 }
 0x1df   :  { %v2570_v34 = vpop.f32.mrb[6].mxu1 }
 0x1e0   :  { %v3682_v36 = vadd.f32 %v2570_v34, %v621_v33  ;;  %v599_v37 = vpop.f32.mrb[7].mxu1 }
 0x1e1   :  { %v3684_v38 = vadd.f32 %v621_v33, %v599_v37  ;;  %v2580_v39 = vpop.f32.mrb[4].mxu0 }
 0x1e2   :  { %v696_v43 = vpop.f32.mrb[5].mxu0  ;;  %v815_v44 = vmul.f32 %v3682_v36, %v3682_v36  ;;  %v3722_v53 = vadd.f32 %v2580_v39, %v629_v42 }
 0x1e3   :  { %v2573_v40 = vpop.f32.mrb[8].mxu1  ;;  %2616 = vmatprep.mubr.f32.mxu0 %v3684_v38  ;;  %v814_v41 = vmul.f32 %v3684_v38, %v3684_v38  ;;  %v3703_v50 = vadd.f32 %v696_v43, %v629_v42 }
 0x1e4   :  { %v3694_v45 = vadd.f32 %v2573_v40, %v621_v33  ;;  %v609_v46 = vpop.f32.mrb[9].mxu1  ;;  %2617 = vmatmul.mubr.f32.vlgmr.msra.gmra.mrb[8].mxu0 %v3682_v36 }
 0x1e5   :  { %v3697_v47 = vadd.f32 %v621_v33, %v609_v46  ;;  %2654 = vmatprep.mubr.f32.mxu1 %v814_v41  ;;  %v2583_v48 = vpop.f32.mrb[6].mxu0  ;;  %2661 = vmatpush3.msra.mxu0 %v3736_v56 }
 0x1e6   :  { %2655 = vmatmul.mubr.f32.vlgmr.msra.gmra.mrb[10].mxu1 %v815_v44  ;;  %v706_v51 = vpop.f32.mrb[7].mxu0  ;;  %v817_v52 = vmul.f32 %v3694_v45, %v3694_v45  ;;  %v3728_v55 = vadd.f32 %v2583_v48, %v629_v42  ;;  %2665 = vmatprep.subr.mxu0 %v3374_v0 }
 0x1e7   :  { %2619 = vmatprep.mubr.f32.mxu0 %v3697_v47  ;;  %v816_v49 = vmul.f32 %v3697_v47, %v3697_v47  ;;  %3067 = vmatpush3.bf16.msra.mxu1 %v3557_v63  ;;  %v3725_v54 = vadd.f32 %v706_v51, %v629_v42  ;;  %v1211_v42 = vmul.f32 %v3703_v50, %v3703_v50 }
 0x1e8   :  { %2620 = vmatmul.mubr.f32.gmra.mrb[10].mxu0 %v3694_v45  ;;  %3069 = vmatprep.subr.bf16.mxu1 %v3584_v10 }
 0x1e9   :  { %2657 = vmatprep.mubr.f32.mxu1 %v816_v49  ;;  %2662 = vmatprep.mubr.msk.f32.mxu0 %vm3375_vm2, %v3374_v0 }
 0x1ea   :  { %2658 = vmatmul.mubr.f32.gmra.mrb[12].mxu1 %v817_v52 }
 0x1eb   :  { %3071 = vmatpush3.bf16.msra.mxu1 %v3584_v10  ;;  %2702 = vmatprep.mubr.f32.mxu1 %v3703_v50 }
 0x1ec   :  { %3073 = vmatprep.subr.bf16.mxu1 %v3598_v13 }
 0x1ef   :  { %3075 = vmatpush3.bf16.msra.mxu1 %v3598_v13 }
 0x1f0   :  { %3077 = vmatprep.subr.bf16.mxu1 %v3611_v16 }
 0x1f3   :  { %3079 = vmatpush3.bf16.msra.mxu1 %v3611_v16 }
 0x1f4   :  { %3081 = vmatprep.subr.bf16.mxu1 %v3623_v19 }
 0x1f7   :  { %3083 = vmatpush3.bf16.msra.mxu1 %v3623_v19 }
 0x1f8   :  { %3085 = vmatprep.subr.bf16.mxu1 %v3635_v22 }
 0x1fb   :  { %3087 = vmatpush3.bf16.msra.mxu1 %v3635_v22 }
 0x1fc   :  { %3089 = vmatprep.subr.bf16.mxu1 %v3647_v25 }
 0x1ff   :  { %3091 = vmatpush3.bf16.msra.mxu1 %v3647_v25 }
 0x200   :  { %3093 = vmatprep.subr.bf16.mxu1 %v3662_v28 }
 0x203   :  { %3095 = vmatpush3.bf16.msra.mxu1 %v3662_v28 }
 0x204   :  { %2746 = vmatprep.subr.mxu1 %v3374_v0 }
 0x206   :  { %2703 = vmatmul.mubr.f32.vlgmr.msra.gmra.mrb[14].mxu1 %v3722_v53 }
 0x207   :  { %2705 = vmatprep.mubr.f32.mxu1 %v3725_v54  ;;  %2747 = vmatpush3.msra.mxu1 %v3736_v56 }
 0x208   :  { %2751 = vmatprep.subr.mxu1 %v3374_v0 }
 0x20a   :  { %2706 = vmatmul.mubr.f32.gmra.mrb[16].mxu1 %v3728_v55 }
 0x20b   :  { %2748 = vmatprep.mubr.msk.f32.mxu1 %vm3375_vm2, %v3374_v0 }
 0x2b7   :  { %v2618_v57 = vpop.f32.mrb[8].mxu0 }
 0x2b8   :  { %v802_v58 = vsel %vm800_vm3, %v2618_v57, 0.0  ;;  %v781_v59 = vpop.f32.mrb[9].mxu0 }
 0x2b9   :  { %v801_v60 = vsel %vm800_vm3, %v781_v59, 0.0  ;;  %v2656_v61 = vpop.f32.mrb[10].mxu1 }
 0x2ba   :  { %v803_v62 = vadd.f32 %v802_v58, %v801_v60  ;;  %v904_v1 = vsel %vm800_vm3, %v2656_v61, 0.0  ;;  %v884_v2 = vpop.f32.mrb[11].mxu1 }
 0x2bb   :  { %v903_v3 = vsel %vm800_vm3, %v884_v2, 0.0  ;;  %v2621_v4 = vpop.f32.mrb[10].mxu0 }
 0x2bc   :  { %v905_v5 = vadd.f32 %v904_v1, %v903_v3  ;;  %v791_v6 = vpop.f32.mrb[11].mxu0  ;;  %v806_v12 = vsel %vm800_vm3, %v2621_v4, 0.0 }
 0x2bd   :  { %v804_v7 = vsel %vm800_vm3, %v791_v6, 0.0  ;;  %v2659_v8 = vpop.f32.mrb[12].mxu1  ;;  %v1213_v6 = vmul.f32 %v3725_v54, %v3725_v54 }
 0x2be   :  { %v805_v9 = vadd.f32 %v804_v7, %v803_v62  ;;  %v894_v11 = vpop.f32.mrb[13].mxu1  ;;  %v908_v18 = vsel %vm800_vm3, %v2659_v8, 0.0  ;;  %v1214_v7 = vmul.f32 %v3728_v55, %v3728_v55  ;;  %v1506_v8 = vld [vmem:[#allocation4] sm:$0xff] }
 0x2bf   :  { %v906_v14 = vsel %vm800_vm3, %v894_v11, 0.0 }
 0x2c0   :  { %v807_v15 = vadd.f32 %v806_v12, %v805_v9  ;;  %v907_v17 = vadd.f32 %v906_v14, %v905_v5  ;;  %v1212_v5 = vmul.f32 %v3722_v53, %v3722_v53  ;;  %v1507_v9 = vld [vmem:[#allocation4 + $0x8] sm:$0xff]  ;;  %v1508_v12 = vld [vmem:[#allocation4 + $0x10] sm:$0xff]  ;;  %v1509_v14 = vld [vmem:[#allocation4 + $0x18] sm:$0xff] }
 0x2c1   :  { %v3128_v11 = vpack.c.bf16 %v1507_v9, %v1506_v8  ;;  %v1091_v9 = vsub.s32 4, %v3670_v30 }
 0x2c2   :  { %v808_v20 = vrot.slane %v807_v15, 4  ;;  %v909_v21 = vadd.f32 %v908_v18, %v907_v17  ;;  %v1510_v17 = vld [vmem:[#allocation4 + $0x20] sm:$0xff] }
 0x2c4   :  { %v809_v23 = vadd.f32 %v808_v20, %v807_v15  ;;  %v910_v24 = vrot.slane %v909_v21, 4  ;;  %v3132_v15 = vpack.c.bf16 %v1509_v14, %v1508_v12  ;;  %v1512_v20 = vld [vmem:[#allocation4 + $0x30] sm:$0xff] }
 0x2c6   :  { %v810_v26 = vrot.slane %v809_v23, 2  ;;  %v911_v27 = vadd.f32 %v910_v24, %v909_v21  ;;  %v1513_v21 = vld [vmem:[#allocation4 + $0x38] sm:$0xff]  ;;  %v1514_v24 = vld [vmem:[#allocation4 + $0x40] sm:$0xff] }
 0x2c8   :  { %v811_v29 = vadd.f32 %v810_v26, %v809_v23  ;;  %v912_v33 = vrot.slane %v911_v27, 2  ;;  %v3140_v23 = vpack.c.bf16 %v1513_v21, %v1512_v20  ;;  %v1515_v26 = vld [vmem:[#allocation4 + $0x48] sm:$0xff] }
 0x2ca   :  { %v812_v34 = vrot.slane %v811_v29, 1  ;;  %v913_v37 = vadd.f32 %v912_v33, %v911_v27  ;;  %v3144_v27 = vpack.c.bf16 %v1515_v26, %v1514_v24  ;;  %v1517_v33 = vld [vmem:[#allocation4 + $0x58] sm:$0xff] }
 0x2cc   :  { %v813_v39 = vadd.f32 %v812_v34, %v811_v29  ;;  %v914_v40 = vrot.slane %v913_v37, 1  ;;  %v1516_v29 = vld [vmem:[#allocation4 + $0x50] sm:$0xff] }
 0x2cd   :  { %v3148_v34 = vpack.c.bf16 %v1517_v33, %v1516_v29 }
 0x2ce   :  { %2663 = vmatmul.mubr.msk.f32.vlgmr.msra.gmra.mrb[12].mxu0 %vm800_vm3, %v813_v39  ;;  %v915_v41 = vadd.f32 %v914_v40, %v913_v37  ;;  %v1518_v37 = vld [vmem:[#allocation4 + $0x60] sm:$0xff]  ;;  %v1519_v39 = vld [vmem:[#allocation4 + $0x68] sm:$0xff] }
 0x2cf   :  { %2666 = vmatpush3.msra.mxu0 %v3736_v56  ;;  %2667 = vmatprep.mubr.msk.f32.mxu0 %vm3375_vm2, %v3374_v0  ;;  %v3152_v40 = vpack.c.bf16 %v1519_v39, %v1518_v37 }
 0x2d0   :  { %3097 = vmatprep.subr.bf16.mxu0 %v3557_v63 }
 0x2d2   :  { %2668 = vmatmul.mubr.msk.f32.vlgmr.msra.gmra.mrb[14].mxu0 %vm800_vm3, %v915_v41  ;;  %v1520_v41 = vld [vmem:[#allocation4 + $0x70] sm:$0xff] }
 0x2d3   :  { %3099 = vmatpush3.bf16.msra.mxu0 %v3557_v63  ;;  %2740 = vmatprep.mubr.f32.mxu0 %v1211_v42  ;;  %v1521_v42 = vld [vmem:[#allocation4 + $0x78] sm:$0xff] }
 0x2d4   :  { %3101 = vmatprep.subr.bf16.mxu0 %v3584_v10 }
 0x2d7   :  { %3103 = vmatpush3.bf16.msra.mxu0 %v3584_v10 }
 0x2d8   :  { %3105 = vmatprep.subr.bf16.mxu0 %v3598_v13 }
 0x2d9   :  { %v2704_v43 = vpop.f32.mrb[14].mxu1 }
 0x2da   :  { %v1199_v44 = vsel %vm800_vm3, %v2704_v43, 0.0  ;;  %v1179_v46 = vpop.f32.mrb[15].mxu1  ;;  %v3156_v43 = vpack.c.bf16 %v1521_v42, %v1520_v41 }
 0x2db   :  { %3107 = vmatpush3.bf16.msra.mxu0 %v3598_v13  ;;  %v1198_v48 = vsel %vm800_vm3, %v1179_v46, 0.0  ;;  %v1621_v46 = vld [vmem:[#allocation4 + $0x88] sm:$0xff] }
 0x2dc   :  { %3109 = vmatprep.subr.bf16.mxu0 %v3611_v16  ;;  %v1200_v49 = vadd.f32 %v1199_v44, %v1198_v48  ;;  %v1620_v44 = vld [vmem:[#allocation4 + $0x80] sm:$0xff] }
 0x2dd   :  { %v2707_v51 = vpop.f32.mrb[16].mxu1  ;;  %v3792_v48 = vpack.c.bf16 %v1621_v46, %v1620_v44 }
 0x2de   :  { %v1189_v52 = vpop.f32.mrb[17].mxu1  ;;  %v1203_v57 = vsel %vm800_vm3, %v2707_v51, 0.0 }
 0x2df   :  { %3111 = vmatpush3.bf16.msra.mxu0 %v3611_v16  ;;  %v1201_v58 = vsel %vm800_vm3, %v1189_v52, 0.0 }
 0x2e0   :  { %3113 = vmatprep.subr.bf16.mxu0 %v3623_v19  ;;  %v1202_v59 = vadd.f32 %v1201_v58, %v1200_v49 }
 0x2e2   :  { %v1204_v60 = vadd.f32 %v1203_v57, %v1202_v59 }
 0x2e3   :  { %3115 = vmatpush3.bf16.msra.mxu0 %v3623_v19 }
 0x2e4   :  { %3117 = vmatprep.subr.bf16.mxu0 %v3635_v22  ;;  %v1205_v61 = vrot.slane %v1204_v60, 4 }
 0x2e6   :  { %v1206_v62 = vadd.f32 %v1205_v61, %v1204_v60 }
 0x2e7   :  { %3119 = vmatpush3.bf16.msra.mxu0 %v3635_v22 }
 0x2e8   :  { %3121 = vmatprep.subr.bf16.mxu0 %v3647_v25  ;;  %v1207_v1 = vrot.slane %v1206_v62, 2 }
 0x2ea   :  { %v1208_v2 = vadd.f32 %v1207_v1, %v1206_v62 }
 0x2eb   :  { %3123 = vmatpush3.bf16.msra.mxu0 %v3647_v25 }
 0x2ec   :  { %3125 = vmatprep.subr.bf16.mxu0 %v3662_v28  ;;  %v1209_v3 = vrot.slane %v1208_v2, 1 }
 0x2ee   :  { %v1210_v4 = vadd.f32 %v1209_v3, %v1208_v2 }
 0x2ef   :  { %3127 = vmatpush3.bf16.msra.mxu0 %v3662_v28 }
 0x2f0   :  { %2749 = vmatmul.mubr.msk.f32.vlgmr.msra.gmra.mrb[18].mxu1 %vm800_vm3, %v1210_v4  ;;  %3129 = vmatprep.subr.bf16.mxu0 %v3128_v11  ;;  %v1083_v4 = vsub.s32 3, %v3670_v30 }
 0x2f1   :  { %2752 = vmatpush3.msra.mxu1 %v3736_v56  ;;  %2753 = vmatprep.mubr.msk.f32.mxu1 %vm3375_vm2, %v3374_v0  ;;  %v1511_v0 = vld [vmem:[#allocation4 + $0x28] sm:$0xff] }
 0x2f2   :  { %2741 = vmatmul.mubr.f32.vlgmr.msra.gmra.mrb[16].mxu0 %v1212_v5  ;;  %3225 = vmatprep.subr.bf16.mxu1 %v3557_v63  ;;  %v3136_v18 = vpack.c.bf16 %v1511_v0, %v1510_v17 }
 0x2f3   :  { %2743 = vmatprep.mubr.f32.mxu0 %v1213_v6  ;;  %3131 = vmatpush3.bf16.msra.mxu0 %v3128_v11  ;;  %v3801_v11 = vld [vmem:[%s3952_s4 + $0x8] sm:$0x7]  ;;  %s3376_s4 = smov [#allocation7]  }
 0x2f4   :  { %3133 = vmatprep.subr.bf16.mxu0 %v3132_v15  ;;  %v1104_v21 = vrot.slane %v3801_v11, %v628_v35  ;;  %s2256_s23 = sshll.u32 %s3376_s4, 4  ;;  %s2257_s23 = int_to_ptr.vmem [resolvable:$true] %s2256_s23 }
 0x2f5   :  { %s3345_s3 = scalar_lea.vmem %s2257_s23, 512  ;;  %p3350_p9 = scmp.lt.s32.totalorder %s2257_s23, %s2257_s23 }
 0x2f6   :  { %2744 = vmatmul.mubr.f32.gmra.mrb[18].mxu0 %v1214_v7  ;;  %p3346_p8 = scmp.ne.s32.totalorder %s2257_s23, %s3345_s3  ;;  %p3351_p10 = scmp.lt.s32.totalorder %s3345_s3, %s3345_s3 }
 0x2f7   :  { %3135 = vmatpush3.bf16.msra.mxu0 %v3132_v15 }
 0x2f8   :  { %3137 = vmatprep.subr.bf16.mxu0 %v3136_v18  ;;  %p3352_p11 = por %p3351_p10, %p3350_p9 }
 0x2fa   :  { %p3353_p12 = pnand %p3352_p11, %p3346_p8 }
 0x2fb   :  { %3139 = vmatpush3.bf16.msra.mxu0 %v3136_v18 }
 0x2fc   :  { %3141 = vmatprep.subr.bf16.mxu0 %v3140_v23 }
 0x2ff   :  { %3143 = vmatpush3.bf16.msra.mxu0 %v3140_v23 }
 0x300   :  { %3145 = vmatprep.subr.bf16.mxu0 %v3144_v27 }
 0x303   :  { %3147 = vmatpush3.bf16.msra.mxu0 %v3144_v27 }
 0x304   :  { %3149 = vmatprep.subr.bf16.mxu0 %v3148_v34 }
 0x307   :  { %3151 = vmatpush3.bf16.msra.mxu0 %v3148_v34 }
 0x308   :  { %3153 = vmatprep.subr.bf16.mxu0 %v3152_v40 }
 0x30b   :  { %3155 = vmatpush3.bf16.msra.mxu0 %v3152_v40 }
 0x30c   :  { %3157 = vmatprep.subr.bf16.mxu0 %v3156_v43 }
 0x30f   :  { %3159 = vmatpush3.bf16.msra.mxu0 %v3156_v43 }
 0x310   :  { %3161 = vmatprep.subr.bf16.mxu0 %v3792_v48 }
 0x3a1   :  { %v985_v49 = vpop.f32.mrb[12].mxu0 }
 0x3a2   :  { %v990_v51 = vmul.f32 0.001953125, %v985_v49  ;;  %v2664_v52 = vpop.f32.mrb[13].mxu0 }
 0x3a4   :  { %v1065_v58 = vmul.f32 %v990_v51, %v990_v51 }
 0x3a5   :  { %v1060_v57 = vpop.f32.mrb[14].mxu0 }
 0x3a6   :  { %v1064_v59 = vmul.f32 0.001953125, %v1060_v57  ;;  %v2669_v60 = vpop.f32.mrb[15].mxu0 }
 0x3a8   :  { %v1066_v61 = vsub.f32 %v1064_v59, %v1065_v58  ;;  %v1622_v58 = vld [vmem:[#allocation4 + $0x90] sm:$0xff]  ;;  %v1623_v59 = vld [vmem:[#allocation4 + $0x98] sm:$0xff] }
 0x3aa   :  { %v1067_v62 = vadd.f32 1e-05, %v1066_v61 }
 0x3ac   :  { %3316 = vrsqrt.f32 %v1067_v62 }
 0x3b6   :  { %v3317_v1 = vpop.eup %3316 }
 0x3b7   :  { %v1070_v2 = vrot.slane %v3317_v1, 5  ;;  %v3164_v1 = vpack.c.bf16 %v1623_v59, %v1622_v58 }
 0x3b9   :  { %v1072_v3 = vmul.f32 %v1070_v2, %v3676_v32 }
 0x3bb   :  { %v1074_v5 = vrot.slane %v1072_v3, 3  ;;  %v1084_v7 = vrot.slane %v1072_v3, %v1083_v4  ;;  %v1624_v3 = vld [vmem:[#allocation4 + $0xa0] sm:$0xff]  ;;  %v1625_v4 = vld [vmem:[#allocation4 + $0xa8] sm:$0xff] }
 0x3bd   :  { %v1076_v6 = vmul.f32 %v1074_v5, %v990_v51  ;;  %v1085_v14 = vmul.f32 %v1084_v7, %v3684_v38  ;;  %v1086_v15 = vmul.f32 %v1084_v7, %v3682_v36  ;;  %v1087_v17 = vmul.f32 %v1084_v7, %v3697_v47 }
 0x3be   :  { %v1088_v0 = vmul.f32 %v1084_v7, %v3694_v45  ;;  %v3168_v7 = vpack.c.bf16 %v1625_v4, %v1624_v3  ;;  %v1744_v3 = vld [vmem:[#allocation4 + $0x170] sm:$0xff]  ;;  %v1745_v4 = vld [vmem:[#allocation4 + $0x178] sm:$0xff] }
 0x3bf   :  { %v1078_v8 = vrot.slane %v1076_v6, 4 }
 0x3c1   :  { %v1080_v12 = vsub.f32 %v3676_v32, %v1078_v8 }
 0x3c3   :  { %v1092_v18 = vrot.slane %v1080_v12, %v1091_v9  ;;  %v3808_v20 = vpop.f32.mrb[18].mxu1  ;;  %v1626_v12 = vld [vmem:[#allocation4 + $0xb0] sm:$0xff] }
 0x3c4   :  { %v2750_v23 = vpop.f32.mrb[19].mxu1 }
 0x3c5   :  { %v1093_v24 = vadd.f32 %v1092_v18, %v1085_v14  ;;  %v1094_v26 = vadd.f32 %v1092_v18, %v1086_v15  ;;  %v1095_v27 = vadd.f32 %v1092_v18, %v1087_v17  ;;  %v1096_v29 = vadd.f32 %v1092_v18, %v1088_v0  ;;  %v2742_v33 = vpop.f32.mrb[16].mxu0  ;;  %v1627_v14 = vld [vmem:[#allocation4 + $0xb8] sm:$0xff]  ;;  %v1628_v18 = vld [vmem:[#allocation4 + $0xc0] sm:$0xff]  ;;  %v1630_v23 = vld [vmem:[#allocation4 + $0xd0] sm:$0xff] }
 0x3c6   :  { %v1301_v38 = vsel %vm800_vm3, %v2742_v33, 0.0  ;;  %v1281_v36 = vpop.f32.mrb[17].mxu0  ;;  %v3172_v17 = vpack.c.bf16 %v1627_v14, %v1626_v12 }
 0x3c7   :  { %vm1097_vm4 = vcmp.ge.f32.partialorder %v1093_v24, 0.0  ;;  %vm1098_vm5 = vcmp.ge.f32.partialorder %v1094_v26, 0.0  ;;  %vm1099_vm6 = vcmp.ge.f32.partialorder %v1095_v27, 0.0  ;;  %vm1100_vm7 = vcmp.ge.f32.partialorder %v1096_v29, 0.0 }
 0x3c8   :  { %v1105_v45 = vmul.f32 %v1104_v21, %v1093_v24  ;;  %v1106_v47 = vmul.f32 %v1104_v21, %v1094_v26  ;;  %v1107_v34 = vmul.f32 %v1104_v21, %v1095_v27  ;;  %v1108_v37 = vmul.f32 %v1104_v21, %v1096_v29  ;;  %v1629_v21 = vld [vmem:[#allocation4 + $0xc8] sm:$0xff] }
 0x3c9   :  { %v1300_v39 = vsel %vm800_vm3, %v1281_v36, 0.0  ;;  %v2745_v35 = vpop.f32.mrb[18].mxu0  ;;  %v1635_v36 = vld [vmem:[#allocation4 + $0xf8] sm:$0xff] }
 0x3ca   :  { %v1109_v40 = vsel %vm1097_vm4, %v1093_v24, %v1105_v45  ;;  %v3815_v41 = vsel %vm1098_vm5, %v1094_v26, %v1106_v47  ;;  %v3817_v42 = vsel %vm1099_vm6, %v1095_v27, %v1107_v34  ;;  %v3819_v43 = vsel %vm1100_vm7, %v1096_v29, %v1108_v37  ;;  %v1291_v44 = vpop.f32.mrb[19].mxu0  ;;  %v1631_v24 = vld [vmem:[#allocation4 + $0xd8] sm:$0xff]  ;;  %v1632_v27 = vld [vmem:[#allocation4 + $0xe0] sm:$0xff]  ;;  %v1633_v29 = vld [vmem:[#allocation4 + $0xe8] sm:$0xff] }
 0x3cb   :  { %1498 = vst [vmem:[#allocation3 + $0x8] sm:$0xff] %v1109_v40  ;;  %1499 = vst [vmem:[#allocation3 + $0x10] sm:$0xff] %v3815_v41  ;;  %v1302_v46 = vadd.f32 %v1301_v38, %v1300_v39  ;;  %v1303_v49 = vsel %vm800_vm3, %v1291_v44, 0.0  ;;  %v1305_v52 = vsel %vm800_vm3, %v2745_v35, 0.0  ;;  %v3180_v26 = vpack.c.bf16 %v1631_v24, %v1630_v23  ;;  %v1634_v38 = vld [vmem:[#allocation4 + $0xf0] sm:$0xff]  ;;  %v1730_v47 = vld [vmem:[#allocation4 + $0x100] sm:$0xff] }
 0x3cc   :  { %1500 = vst [vmem:[#allocation3 + $0x28] sm:$0xff] %v3817_v42  ;;  %1501 = vst [vmem:[#allocation3 + $0x30] sm:$0xff] %v3819_v43  ;;  %v3184_v33 = vpack.c.bf16 %v1633_v29, %v1632_v27  ;;  %v3188_v45 = vpack.c.bf16 %v1635_v36, %v1634_v38  ;;  %v1731_v34 = vld [vmem:[#allocation4 + $0x108] sm:$0xff]  ;;  %v1732_v39 = vld [vmem:[#allocation4 + $0x110] sm:$0xff]  ;;  %v1476_v23 = vsub.s32 7, %v3670_v30 }
 0x3cd   :  { %v1304_v51 = vadd.f32 %v1303_v49, %v1302_v46  ;;  %v3192_v37 = vpack.c.bf16 %v1731_v34, %v1730_v47  ;;  %v1733_v35 = vld [vmem:[#allocation4 + $0x118] sm:$0xff]  ;;  %v1734_v44 = vld [vmem:[#allocation4 + $0x120] sm:$0xff]  ;;  %v1735_v46 = vld [vmem:[#allocation4 + $0x128] sm:$0xff] }
 0x3ce   :  { %v3200_v49 = vpack.c.bf16 %v1735_v46, %v1734_v44 }
 0x3cf   :  { %v1306_v57 = vadd.f32 %v1305_v52, %v1304_v51  ;;  %v1736_v51 = vld [vmem:[#allocation4 + $0x130] sm:$0xff]  ;;  %v1737_v52 = vld [vmem:[#allocation4 + $0x138] sm:$0xff] }
 0x3d0   :  { %v3204_v58 = vpack.c.bf16 %v1737_v52, %v1736_v51 }
 0x3d1   :  { %v1307_v60 = vrot.slane %v1306_v57, 4 }
 0x3d2   :  { %v1502_v61 = vld [vmem:[#allocation3 + $0x7] sm:$0xff]  ;;  %v1503_v62 = vld [vmem:[#allocation3 + $0xf] sm:$0xff] }
 0x3d3   :  { %v1308_v2 = vadd.f32 %v1307_v60, %v1306_v57  ;;  %2788 = vmatprep.mubr.f32.mxu0 %v1502_v61  ;;  %v1504_v5 = vld [vmem:[#allocation3 + $0x27] sm:$0xff]  ;;  %v1505_v9 = vld [vmem:[#allocation3 + $0x2f] sm:$0xff]  ;;  %v1741_v61 = vld [vmem:[#allocation4 + $0x158] sm:$0xff] }
 0x3d4   :  { %2789 = vmatmul.mubr.f32.vlgmr.msra.gmra.mrb[20].mxu0 %v1503_v62  ;;  %v1725_v57 = vld [vmem:[#allocation3 + $0x9] sm:$0xff] }
 0x3d5   :  { %v1309_v6 = vrot.slane %v1308_v2, 2  ;;  %3163 = vmatpush3.bf16.msra.mxu0 %v3792_v48  ;;  %2791 = vmatprep.mubr.f32.mxu0 %v1504_v5  ;;  %v3176_v48 = vpack.c.bf16 %v1629_v21, %v1628_v18  ;;  %v1740_v60 = vld [vmem:[#allocation4 + $0x150] sm:$0xff]  ;;  %v3220_v5 = vpack.c.bf16 %v1745_v4, %v1744_v3 }
 0x3d6   :  { %3165 = vmatprep.subr.bf16.mxu0 %v3164_v1  ;;  %v3212_v62 = vpack.c.bf16 %v1741_v61, %v1740_v60 }
 0x3d7   :  { %v1310_v8 = vadd.f32 %v1309_v6, %v1308_v2  ;;  %v1726_v6 = vld [vmem:[#allocation3 + $0x11] sm:$0xff] }
 0x3d8   :  { %2792 = vmatmul.mubr.f32.gmra.mrb[22].mxu0 %v1505_v9  ;;  %v1386_v9 = vmul.f32 0.001953125, %v3808_v20 }
 0x3d9   :  { %v1311_v15 = vrot.slane %v1310_v8, 1  ;;  %3167 = vmatpush3.bf16.msra.mxu0 %v3164_v1  ;;  %2826 = vmatprep.mubr.f32.mxu0 %v1109_v40  ;;  %v3196_v40 = vpack.c.bf16 %v1733_v35, %v1732_v39  ;;  %v1743_v1 = vld [vmem:[#allocation4 + $0x168] sm:$0xff] }
 0x3da   :  { %3169 = vmatprep.subr.bf16.mxu0 %v3168_v7  ;;  %v1461_v14 = vmul.f32 %v1386_v9, %v1386_v9 }
 0x3db   :  { %v1312_v0 = vadd.f32 %v1311_v15, %v1310_v8  ;;  %v1728_v8 = vld [vmem:[#allocation3 + $0x31] sm:$0xff] }
 0x3dd   :  { %2754 = vmatmul.mubr.msk.f32.vlgmr.msra.gmra.mrb[20].mxu1 %vm800_vm3, %v1312_v0  ;;  %3171 = vmatpush3.bf16.msra.mxu0 %v3168_v7  ;;  %v1727_v7 = vld [vmem:[#allocation3 + $0x29] sm:$0xff] }
 0x3de   :  { %3173 = vmatprep.subr.bf16.mxu0 %v3172_v17  ;;  %3227 = vmatpush3.bf16.msra.mxu1 %v3557_v63 }
 0x3df   :  { %3229 = vmatprep.subr.bf16.mxu1 %v3584_v10 }
 0x3e1   :  { %3175 = vmatpush3.bf16.msra.mxu0 %v3172_v17 }
 0x3e2   :  { %3177 = vmatprep.subr.bf16.mxu0 %v3176_v48  ;;  %3231 = vmatpush3.bf16.msra.mxu1 %v3584_v10 }
 0x3e3   :  { %3233 = vmatprep.subr.bf16.mxu1 %v3598_v13 }
 0x3e5   :  { %3179 = vmatpush3.bf16.msra.mxu0 %v3176_v48 }
 0x3e6   :  { %3181 = vmatprep.subr.bf16.mxu0 %v3180_v26  ;;  %3235 = vmatpush3.bf16.msra.mxu1 %v3598_v13 }
 0x3e7   :  { %3237 = vmatprep.subr.bf16.mxu1 %v3611_v16 }
 0x3e9   :  { %3183 = vmatpush3.bf16.msra.mxu0 %v3180_v26 }
 0x3ea   :  { %3185 = vmatprep.subr.bf16.mxu0 %v3184_v33  ;;  %3239 = vmatpush3.bf16.msra.mxu1 %v3611_v16 }
 0x3eb   :  { %3241 = vmatprep.subr.bf16.mxu1 %v3623_v19 }
 0x3ed   :  { %3187 = vmatpush3.bf16.msra.mxu0 %v3184_v33 }
 0x3ee   :  { %3189 = vmatprep.subr.bf16.mxu0 %v3188_v45  ;;  %3243 = vmatpush3.bf16.msra.mxu1 %v3623_v19 }
 0x3ef   :  { %3245 = vmatprep.subr.bf16.mxu1 %v3635_v22 }
 0x3f1   :  { %3191 = vmatpush3.bf16.msra.mxu0 %v3188_v45 }
 0x3f2   :  { %3193 = vmatprep.subr.bf16.mxu0 %v3192_v37  ;;  %3247 = vmatpush3.bf16.msra.mxu1 %v3635_v22 }
 0x3f3   :  { %3249 = vmatprep.subr.bf16.mxu1 %v3647_v25 }
 0x3f4   :  { %2827 = vmatmul.mubr.f32.vlgmr.msra.gmra.mrb[20].mxu0 %v3815_v41  ;;  %v1738_v41 = vld [vmem:[#allocation4 + $0x140] sm:$0xff] }
 0x3f5   :  { %2829 = vmatprep.mubr.f32.mxu0 %v3817_v42  ;;  %3195 = vmatpush3.bf16.msra.mxu0 %v3192_v37  ;;  %v1739_v42 = vld [vmem:[#allocation4 + $0x148] sm:$0xff] }
 0x3f6   :  { %3197 = vmatprep.subr.bf16.mxu0 %v3196_v40  ;;  %3251 = vmatpush3.bf16.msra.mxu1 %v3647_v25  ;;  %v3208_v59 = vpack.c.bf16 %v1739_v42, %v1738_v41 }
 0x3f7   :  { %3253 = vmatprep.subr.bf16.mxu1 %v3662_v28 }
 0x3f8   :  { %2830 = vmatmul.mubr.f32.gmra.mrb[22].mxu0 %v3819_v43  ;;  %v1742_v43 = vld [vmem:[#allocation4 + $0x160] sm:$0xff] }
 0x3f9   :  { %3199 = vmatpush3.bf16.msra.mxu0 %v3196_v40  ;;  %2864 = vmatprep.mubr.f32.mxu0 %v1725_v57  ;;  %v3216_v2 = vpack.c.bf16 %v1743_v1, %v1742_v43  ;;  %v1609_v40 = vsub.s32 2, %v3670_v30 }
 0x3fa   :  { %3201 = vmatprep.subr.bf16.mxu0 %v3200_v49  ;;  %3255 = vmatpush3.bf16.msra.mxu1 %v3662_v28 }
 0x3fb   :  { %3257 = vmatprep.subr.bf16.mxu1 %v3557_v63 }
 0x3fd   :  { %3203 = vmatpush3.bf16.msra.mxu0 %v3200_v49 }
 0x3fe   :  { %3205 = vmatprep.subr.bf16.mxu0 %v3204_v58 }
 0x401   :  { %3207 = vmatpush3.bf16.msra.mxu0 %v3204_v58 }
 0x402   :  { %3209 = vmatprep.subr.bf16.mxu0 %v3208_v59 }
 0x405   :  { %3211 = vmatpush3.bf16.msra.mxu0 %v3208_v59 }
 0x406   :  { %3213 = vmatprep.subr.bf16.mxu0 %v3212_v62 }
 0x409   :  { %3215 = vmatpush3.bf16.msra.mxu0 %v3212_v62 }
 0x40a   :  { %3217 = vmatprep.subr.bf16.mxu0 %v3216_v2 }
 0x40d   :  { %3219 = vmatpush3.bf16.msra.mxu0 %v3216_v2 }
 0x40e   :  { %3221 = vmatprep.subr.bf16.mxu0 %v3220_v5 }
 0x411   :  { %3223 = vmatpush3.bf16.msra.mxu0 %v3220_v5 }
 0x414   :  { %2865 = vmatmul.mubr.f32.vlgmr.msra.gmra.mrb[20].mxu0 %v1726_v6 }
 0x415   :  { %2867 = vmatprep.mubr.f32.mxu0 %v1727_v7 }
 0x418   :  { %2868 = vmatmul.mubr.f32.gmra.mrb[22].mxu0 %v1728_v8 }
 0x4b0   :  { %v1456_v12 = vpop.f32.mrb[20].mxu1 }
 0x4b1   :  { %v1460_v15 = vmul.f32 0.001953125, %v1456_v12  ;;  %v2755_v17 = vpop.f32.mrb[21].mxu1 }
 0x4b3   :  { %v1462_v0 = vsub.f32 %v1460_v15, %v1461_v14 }
 0x4b5   :  { %v1463_v18 = vadd.f32 1e-05, %v1462_v0 }
 0x4b7   :  { %3318 = vrsqrt.f32 %v1463_v18 }
 0x4c1   :  { %v3319_v21 = vpop.eup %3318 }
 0x4c2   :  { %v1466_v48 = vrot.slane %v3319_v21, 1 }
 0x4c4   :  { %v1468_v24 = vmul.f32 %v1466_v48, %v3676_v32 }
 0x4c6   :  { %v1470_v26 = vrot.slane %v1468_v24, 7  ;;  %v1477_v27 = vrot.slane %v1468_v24, %v1476_v23 }
 0x4c8   :  { %v1472_v29 = vmul.f32 %v1470_v26, %v1386_v9  ;;  %v1478_v20 = vmul.f32 %v1477_v27, %v3703_v50  ;;  %v1479_v36 = vmul.f32 %v1477_v27, %v3722_v53  ;;  %v1480_v45 = vmul.f32 %v1477_v27, %v3725_v54 }
 0x4c9   :  { %v1481_v47 = vmul.f32 %v1477_v27, %v3728_v55 }
 0x4ca   :  { %v1473_v33 = vsub.f32 %v3801_v11, %v1472_v29 }
 0x4cc   :  { %v1485_v38 = vrot.slane %v1473_v33, %v620_v31  ;;  %v1610_v31 = vrot.slane %v3676_v32, %v1609_v40 }
 0x4ce   :  { %v3857_v34 = vadd.f32 %v1485_v38, %v1478_v20  ;;  %v3859_v37 = vadd.f32 %v1485_v38, %v1479_v36  ;;  %v3861_v39 = vadd.f32 %v1485_v38, %v1480_v45  ;;  %v3863_v35 = vadd.f32 %v1485_v38, %v1481_v47 }
 0x4e7   :  { %v2866_v50 = vpop.f32.mrb[20].mxu0 }
 0x4e8   :  { %v1812_v53 = vpop.f32.mrb[21].mxu0  ;;  %v3871_v54 = vadd.f32 %v2866_v50, %v1610_v31 }
 0x4e9   :  { %v3869_v44 = vadd.f32 %v1812_v53, %v1610_v31 }
 0x4eb   :  { %v2869_v55 = vpop.f32.mrb[22].mxu0  ;;  %2902 = vmatprep.mubr.f32.mxu1 %v3869_v44  ;;  %v1933_v52 = vmul.f32 %v3869_v44, %v3869_v44 }
 0x4ec   :  { %v1822_v46 = vpop.f32.mrb[23].mxu0  ;;  %2903 = vmatmul.mubr.f32.vlgmr.msra.gmra.mrb[22].mxu1 %v3871_v54  ;;  %v3878_v51 = vadd.f32 %v2869_v55, %v1610_v31 }
 0x4ed   :  { %v3875_v49 = vadd.f32 %v1822_v46, %v1610_v31  ;;  %3259 = vmatpush3.bf16.msra.mxu1 %v3557_v63  ;;  %v1934_v63 = vmul.f32 %v3871_v54, %v3871_v54  ;;  %v2201_v46 = vsub.s32 5, %v3670_v30 }
 0x4ee   :  { %3261 = vmatprep.subr.bf16.mxu1 %v3584_v10 }
 0x4ef   :  { %2905 = vmatprep.mubr.f32.mxu1 %v3875_v49 }
 0x4f0   :  { %2906 = vmatmul.mubr.f32.gmra.mrb[24].mxu1 %v3878_v51 }
 0x4f1   :  { %3263 = vmatpush3.bf16.msra.mxu1 %v3584_v10  ;;  %2940 = vmatprep.mubr.f32.mxu1 %v1933_v52  ;;  %v3322_v10 = vld [vmem:[#allocation3] sm:$0xff] }
 0x4f2   :  { %3265 = vmatprep.subr.bf16.mxu1 %v3598_v13 }
 0x4f5   :  { %3267 = vmatpush3.bf16.msra.mxu1 %v3598_v13  ;;  %v1935_v13 = vmul.f32 %v3875_v49, %v3875_v49 }
 0x4f6   :  { %3269 = vmatprep.subr.bf16.mxu1 %v3611_v16 }
 0x4f9   :  { %3271 = vmatpush3.bf16.msra.mxu1 %v3611_v16  ;;  %v1936_v16 = vmul.f32 %v3878_v51, %v3878_v51 }
 0x4fa   :  { %3273 = vmatprep.subr.bf16.mxu1 %v3623_v19 }
 0x4fd   :  { %3275 = vmatpush3.bf16.msra.mxu1 %v3623_v19 }
 0x4fe   :  { %3277 = vmatprep.subr.bf16.mxu1 %v3635_v22 }
 0x501   :  { %3279 = vmatpush3.bf16.msra.mxu1 %v3635_v22 }
 0x502   :  { %3281 = vmatprep.subr.bf16.mxu1 %v3647_v25 }
 0x505   :  { %3283 = vmatpush3.bf16.msra.mxu1 %v3647_v25 }
 0x506   :  { %3285 = vmatprep.subr.bf16.mxu1 %v3662_v28 }
 0x509   :  { %3287 = vmatpush3.bf16.msra.mxu1 %v3662_v28 }
 0x50a   :  { %2946 = vmatprep.subr.mxu1 %v3322_v10 }
 0x50c   :  { %2941 = vmatmul.mubr.f32.vlgmr.msra.gmra.mrb[26].mxu1 %v1934_v63 }
 0x50d   :  { %2943 = vmatprep.mubr.f32.mxu1 %v1935_v13  ;;  %2947 = vmatpush3.msra.mxu1 %v3736_v56 }
 0x50e   :  { %2951 = vmatprep.subr.mxu1 %v3322_v10 }
 0x510   :  { %2944 = vmatmul.mubr.f32.gmra.mrb[28].mxu1 %v1936_v16  ;;  %v2209_v16 = vsub.s32 6, %v3670_v30 }
 0x511   :  { %2948 = vmatprep.mubr.msk.f32.mxu1 %vm3375_vm2, %v3322_v10 }
 0x5bf   :  { %v2904_v19 = vpop.f32.mrb[22].mxu1 }
 0x5c0   :  { %v1921_v22 = vsel %vm800_vm3, %v2904_v19, 0.0  ;;  %v1901_v25 = vpop.f32.mrb[23].mxu1 }
 0x5c1   :  { %v1920_v28 = vsel %vm800_vm3, %v1901_v25, 0.0 }
 0x5c2   :  { %v1922_v57 = vadd.f32 %v1921_v22, %v1920_v28 }
 0x5c3   :  { %v2907_v58 = vpop.f32.mrb[24].mxu1 }
 0x5c4   :  { %v1911_v41 = vpop.f32.mrb[25].mxu1  ;;  %v1925_v60 = vsel %vm800_vm3, %v2907_v58, 0.0 }
 0x5c5   :  { %v1923_v42 = vsel %vm800_vm3, %v1911_v41, 0.0  ;;  %v2222_v41 = vrot.slane %v3801_v11, %v1609_v40 }
 0x5c6   :  { %v1924_v59 = vadd.f32 %v1923_v42, %v1922_v57 }
 0x5c8   :  { %v1926_v61 = vadd.f32 %v1925_v60, %v1924_v59 }
 0x5ca   :  { %v1927_v62 = vrot.slane %v1926_v61, 4 }
 0x5cc   :  { %v1928_v43 = vadd.f32 %v1927_v62, %v1926_v61 }
 0x5ce   :  { %v1929_v1 = vrot.slane %v1928_v43, 2 }
 0x5d0   :  { %v1930_v2 = vadd.f32 %v1929_v1, %v1928_v43 }
 0x5d2   :  { %v1931_v3 = vrot.slane %v1930_v2, 1 }
 0x5d4   :  { %v1932_v4 = vadd.f32 %v1931_v3, %v1930_v2 }
 0x5d6   :  { %2949 = vmatmul.mubr.msk.f32.vlgmr.msra.gmra.mrb[30].mxu1 %vm800_vm3, %v1932_v4 }
 0x5d7   :  { %2952 = vmatpush3.msra.mxu1 %v3736_v56  ;;  %2953 = vmatprep.mubr.msk.f32.mxu1 %vm3375_vm2, %v3322_v10 }
 0x5df   :  { %v2942_v5 = vpop.f32.mrb[26].mxu1 }
 0x5e0   :  { %v2023_v6 = vsel %vm800_vm3, %v2942_v5, 0.0  ;;  %v2003_v7 = vpop.f32.mrb[27].mxu1 }
 0x5e1   :  { %v2022_v8 = vsel %vm800_vm3, %v2003_v7, 0.0 }
 0x5e2   :  { %v2024_v9 = vadd.f32 %v2023_v6, %v2022_v8 }
 0x5e3   :  { %v2945_v12 = vpop.f32.mrb[28].mxu1 }
 0x5e4   :  { %v2013_v14 = vpop.f32.mrb[29].mxu1  ;;  %v2027_v0 = vsel %vm800_vm3, %v2945_v12, 0.0 }
 0x5e5   :  { %v2025_v15 = vsel %vm800_vm3, %v2013_v14, 0.0 }
 0x5e6   :  { %v2026_v17 = vadd.f32 %v2025_v15, %v2024_v9 }
 0x5e8   :  { %v2028_v18 = vadd.f32 %v2027_v0, %v2026_v17 }
 0x5ea   :  { %v2029_v21 = vrot.slane %v2028_v18, 4 }
 0x5ec   :  { %v2030_v48 = vadd.f32 %v2029_v21, %v2028_v18 }
 0x5ee   :  { %v2031_v56 = vrot.slane %v2030_v48, 2 }
 0x5f0   :  { %v2032_v23 = vadd.f32 %v2031_v56, %v2030_v48 }
 0x5f2   :  { %v2033_v24 = vrot.slane %v2032_v23, 1 }
 0x5f4   :  { %v2034_v26 = vadd.f32 %v2033_v24, %v2032_v23 }
 0x5f6   :  { %2954 = vmatmul.mubr.msk.f32.vlgmr.msra.gmra.mrb[32].mxu1 %vm800_vm3, %v2034_v26 }
 0x6a9   :  { %v2104_v27 = vpop.f32.mrb[30].mxu1 }
 0x6aa   :  { %v2950_v29 = vpop.f32.mrb[31].mxu1  ;;  %v2108_v33 = vmul.f32 0.001953125, %v2104_v27 }
 0x6ac   :  { %v2183_v38 = vmul.f32 %v2108_v33, %v2108_v33 }
 0x6c9   :  { %v2178_v20 = vpop.f32.mrb[32].mxu1 }
 0x6ca   :  { %v2182_v36 = vmul.f32 0.001953125, %v2178_v20  ;;  %v2955_v45 = vpop.f32.mrb[33].mxu1 }
 0x6cc   :  { %v2184_v47 = vsub.f32 %v2182_v36, %v2183_v38 }
 0x6ce   :  { %v2185_v31 = vadd.f32 1e-05, %v2184_v47 }
 0x6d0   :  { %3320 = vrsqrt.f32 %v2185_v31 }
 0x6da   :  { %v3321_v50 = vpop.eup %3320 }
 0x6db   :  { %v2188_v53 = vrot.slane %v3321_v50, 3 }
 0x6dd   :  { %v2190_v55 = vmul.f32 %v2188_v53, %v3676_v32 }
 0x6df   :  { %v2192_v52 = vrot.slane %v2190_v55, 5  ;;  %v2202_v10 = vrot.slane %v2190_v55, %v2201_v46 }
 0x6e1   :  { %v2194_v63 = vmul.f32 %v2192_v52, %v2108_v33  ;;  %v2203_v22 = vmul.f32 %v3869_v44, %v2202_v10  ;;  %v2204_v25 = vmul.f32 %v3871_v54, %v2202_v10  ;;  %v2205_v28 = vmul.f32 %v3875_v49, %v2202_v10 }
 0x6e2   :  { %v2206_v57 = vmul.f32 %v3878_v51, %v2202_v10 }
 0x6e3   :  { %v2196_v13 = vrot.slane %v2194_v63, 2 }
 0x6e5   :  { %v2198_v19 = vsub.f32 %v3676_v32, %v2196_v13 }
 0x6e7   :  { %v2210_v58 = vrot.slane %v2198_v19, %v2209_v16 }
 0x6e9   :  { %v2211_v42 = vadd.f32 %v2210_v58, %v2203_v22  ;;  %v2212_v59 = vadd.f32 %v2210_v58, %v2204_v25  ;;  %v2213_v60 = vadd.f32 %v2210_v58, %v2205_v28  ;;  %v2214_v61 = vadd.f32 %v2210_v58, %v2206_v57 }
 0x6eb   :  { %vm2215_vm8 = vcmp.ge.f32.partialorder %v2211_v42, 0.0  ;;  %vm2216_vm9 = vcmp.ge.f32.partialorder %v2212_v59, 0.0  ;;  %vm2217_vm10 = vcmp.ge.f32.partialorder %v2213_v60, 0.0  ;;  %vm2218_vm11 = vcmp.ge.f32.partialorder %v2214_v61, 0.0 }
 0x6ec   :  { %v2223_v32 = vmul.f32 %v2222_v41, %v2211_v42  ;;  %v2224_v44 = vmul.f32 %v2222_v41, %v2212_v59  ;;  %v2225_v54 = vmul.f32 %v2222_v41, %v2213_v60  ;;  %v2226_v62 = vmul.f32 %v2222_v41, %v2214_v61 }
 0x6ee   :  { %v2227_v49 = vsel %vm2215_vm8, %v2211_v42, %v2223_v32  ;;  %v2228_v43 = vsel %vm2216_vm9, %v2212_v59, %v2224_v44  ;;  %v2229_v51 = vsel %vm2217_vm10, %v2213_v60, %v2225_v54  ;;  %v2230_v1 = vsel %vm2218_vm11, %v2214_v61, %v2226_v62 }
 0x6ef   :  { %v2231_v30 = vadd.f32 %v2227_v49, %v3857_v34  ;;  %v2232_v11 = vadd.f32 %v2228_v43, %v3859_v37  ;;  %v2233_v40 = vadd.f32 %v2229_v51, %v3861_v39  ;;  %v2234_v2 = vadd.f32 %v2230_v1, %v3863_v35 }
 0x6f1   :  { %vm2235_vm12 = vcmp.ge.f32.partialorder %v2231_v30, 0.0  ;;  %vm2236_vm13 = vcmp.ge.f32.partialorder %v2232_v11, 0.0  ;;  %vm2237_vm14 = vcmp.ge.f32.partialorder %v2233_v40, 0.0  ;;  %vm2238_vm15 = vcmp.ge.f32.partialorder %v2234_v2, 0.0 }
 0x6f2   :  { %v2239_v3 = vmul.f32 0.25, %v2231_v30  ;;  %v2240_v4 = vmul.f32 0.25, %v2232_v11  ;;  %v2241_v5 = vmul.f32 0.25, %v2233_v40  ;;  %v2242_v6 = vmul.f32 0.25, %v2234_v2 }
 0x6f4   :  { %v2243_v7 = vsel %vm2235_vm12, %v2231_v30, %v2239_v3  ;;  %v2244_v8 = vsel %vm2236_vm13, %v2232_v11, %v2240_v4  ;;  %v2245_v34 = vsel %vm2237_vm14, %v2233_v40, %v2241_v5  ;;  %v2246_v9 = vsel %vm2238_vm15, %v2234_v2, %v2242_v6 }
 0x6f5   :  { %2247 = vst [vmem:[#allocation7] sm:$0xff] %v2243_v7  ;;  %2248 = vst [vmem:[#allocation7 + $0x8] sm:$0xff] %v2244_v8 }
 0x6f6   :  { %2249 = vst [vmem:[#allocation7 + $0x10] sm:$0xff] %v2245_v34  ;;  %2250 = vst [vmem:[#allocation7 + $0x18] sm:$0xff] %v2246_v9 }
 0x6f7   :  { %3356 = shalt.err (!%p3353_p12)
}
 0x6f8   :  { %s3357_s26 = scalar_lea.hbm %s3955_s7, 512 }
 0x6f9   :  { %p3358_p13 = scmp.ne.s32.totalorder %s3955_s7, %s3357_s26  ;;  %p3361_p0 = scmp.lt.u32.totalorder %s3357_s26, %s3955_s7 }
 0x6fb   :  { %p3363_p1 = pnand %p3361_p0, %p3358_p13 }
 0x6fd   :  { %3366 = shalt.err (!%p3363_p1)
}
 0x6fe   :  { %2262 = dma.vmem_to_hbm [thread:$0]  %s2257_s23, 512, %s3955_s7, [#allocation6], %s3372_s11, %s3372_s11, %s3373_s12  }
 0x6ff   :  { %3369 = dma.done.wait [#allocation6], 512  }
 0x700   :  { %3370 = vsyncadd [#allocation6], 4294966784 }
 0x701   :  { %2266 = vsyncpa [#allocation5], 1 }
 0x702   :  { %2267 = vsyncpa [#allocation6], 1 }

</bundles_post_ra>
